<compile_context>
chip_gen: v7x
topology: tpu7x:2x2x1
jax: 0.10.0
libtpu: 0.0.40
codegen_flags: <defaults>
</compile_context>

<pallas_src>
import functools

import jax
import jax.numpy as jnp
from jax.experimental import pallas as pl
from jax.experimental.pallas import tpu as pltpu

# Finite "-inf": exp() underflows to exactly 0 and no (-inf) - (-inf) NaNs.
_NEG_LARGE = -1.0e30


def _attention_kernel(n_ref,                                    # scalar prefetch: [0] = true N
                      x_ref, w1_ref, b1_ref, w2r_ref, b2_ref, wcr_ref, bc_ref,
                      yprob_ref, yhat_ref, sraw_ref, mmax_ref, lden_ref,
                      m_sc, l_sc, acc_sc):
    i = pl.program_id(0)
    tn = x_ref.shape[0]

    @pl.when(i == 0)
    def _init():
        m_sc[...] = jnp.full(m_sc.shape, _NEG_LARGE, m_sc.dtype)
        l_sc[...] = jnp.zeros(l_sc.shape, l_sc.dtype)
        acc_sc[...] = jnp.zeros(acc_sc.shape, acc_sc.dtype)

    x = x_ref[...]                                               # (TN, L)

    # ---- attention MLP ---------------------------------------------------
    # Hidden layer on the MXU, f32 accumulation.
    h1 = jnp.tanh(
        jnp.dot(x, w1_ref[...], preferred_element_type=jnp.float32)
        + b1_ref[...])                                           # (TN, D) f32

    # Linear(D, 1): lane-width-1 MXU output -> do it as VPU mult + lane reduce.
    s_col = (jnp.sum(h1 * w2r_ref[...], axis=-1, keepdims=True)
             + b2_ref[...])                                      # (TN, 1)

    # Mask padding rows (N need not be a multiple of TN).
    row_id = i * tn + jax.lax.broadcasted_iota(jnp.int32, (tn, 1), 0)
    s_col = jnp.where(row_id < n_ref[0], s_col, _NEG_LARGE)

    # ---- online (flash-style) softmax over the instance axis --------------
    m_prev = m_sc[...]                                           # (1, 1)
    m_new = jnp.maximum(m_prev, jnp.max(s_col, axis=0, keepdims=True))
    alpha = jnp.exp(m_prev - m_new)                              # (1, 1)
    e_col = jnp.exp(s_col - m_new)                               # (TN, 1); 0 on padding
    l_sc[...] = alpha * l_sc[...] + jnp.sum(e_col, axis=0, keepdims=True)
    # Un-normalized bag embedding  sum_r e_r * x_r : VPU mult + sublane reduce.
    acc_sc[...] = alpha * acc_sc[...] + jnp.sum(
        e_col * x.astype(jnp.float32), axis=0, keepdims=True)    # (1, L)
    m_sc[...] = m_new

    # ---- lane-dense raw-score output: one (1, TN) slab per tile -----------
    # (TN,1) -> (1,TN) without a minor-dim transpose: masked diagonal +
    # sublane reduce (runs on otherwise idle VPU/XLU slots).
    r2 = jax.lax.broadcasted_iota(jnp.int32, (tn, tn), 0)
    c2 = jax.lax.broadcasted_iota(jnp.int32, (tn, tn), 1)
    s_row = jnp.sum(jnp.where(r2 == c2, s_col, 0.0),
                    axis=0, keepdims=True)                       # (1, TN)
    sraw_ref[0] = s_row

    # ---- epilogue on the last tile only ------------------------------------
    @pl.when(i == pl.num_programs(0) - 1)
    def _finalize():
        inv_l = 1.0 / l_sc[...]            # once per bag -> exact divide is fine
        m_bag = acc_sc[...] * inv_l                              # (1, L) == softmax(A) @ H
        logit = (jnp.sum(m_bag * wcr_ref[...], axis=-1, keepdims=True)
                 + bc_ref[...])                                  # (1, 1)  Linear(L, 1)
        y_prob = jax.nn.sigmoid(logit)
        yprob_ref[...] = y_prob
        yhat_ref[...] = (y_prob >= 0.5).astype(jnp.float32)
        mmax_ref[...] = m_sc[...]
        lden_ref[...] = l_sc[...]


@functools.partial(jax.jit, static_argnames=("tile_n",))
def abmil_attention_forward(x, w1, b1, w2, b2, wc, bc, *, tile_n=256):
    """Returns (Y_prob (1,1), Y_hat (1,1), A (1,N)) matching the torch module."""
    N, L = x.shape
    D = w1.shape[-1]
    assert L % 128 == 0, "feats_size must be a multiple of 128"
    assert D % 128 == 0
    assert tile_n % 128 == 0 and 128 <= tile_n <= 1024

    # Don't pay for padded compute on small bags.
    tile_n = max(128, min(tile_n, ((N + 127) // 128) * 128))

    num_tiles = pl.cdiv(N, tile_n)
    n_pad = num_tiles * tile_n
    if n_pad != N:
        x = jnp.pad(x, ((0, n_pad - N), (0, 0)))

    # Store the two width-1 Linear weights as lane-dense rows.
    w2_row = w2.reshape(1, D)
    wc_row = wc.reshape(1, L)
    b1_row = b1.reshape(1, D)
    b2_s = b2.reshape(1, 1)
    bc_s = bc.reshape(1, 1)
    n_arr = jnp.array([N], dtype=jnp.int32)

    outs = pl.pallas_call(
        _attention_kernel,
        out_shape=(
            jax.ShapeDtypeStruct((1, 1), jnp.float32),                  # Y_prob
            jax.ShapeDtypeStruct((1, 1), jnp.float32),                  # Y_hat
            jax.ShapeDtypeStruct((num_tiles, 1, tile_n), jnp.float32),  # raw scores
            jax.ShapeDtypeStruct((1, 1), jnp.float32),                  # softmax max
            jax.ShapeDtypeStruct((1, 1), jnp.float32),                  # softmax denom
        ),
        grid_spec=pltpu.PrefetchScalarGridSpec(
            num_scalar_prefetch=1,
            grid=(num_tiles,),
            in_specs=[
                pl.BlockSpec((tile_n, L), lambda i, n: (i, 0)),   # x tile (pipelined)
                pl.BlockSpec((L, D), lambda i, n: (0, 0)),        # w1 (VMEM resident)
                pl.BlockSpec((1, D), lambda i, n: (0, 0)),        # b1
                pl.BlockSpec((1, D), lambda i, n: (0, 0)),        # w2 as a row
                pl.BlockSpec((1, 1), lambda i, n: (0, 0)),        # b2
                pl.BlockSpec((1, L), lambda i, n: (0, 0)),        # wc as a row
                pl.BlockSpec((1, 1), lambda i, n: (0, 0)),        # bc
            ],
            out_specs=(
                pl.BlockSpec((1, 1), lambda i, n: (0, 0)),
                pl.BlockSpec((1, 1), lambda i, n: (0, 0)),
                pl.BlockSpec((1, 1, tile_n), lambda i, n: (i, 0, 0)),
                pl.BlockSpec((1, 1), lambda i, n: (0, 0)),
                pl.BlockSpec((1, 1), lambda i, n: (0, 0)),
            ),
            scratch_shapes=[
                pltpu.VMEM((1, 1), jnp.float32),   # running max
                pltpu.VMEM((1, 1), jnp.float32),   # running denominator
                pltpu.VMEM((1, L), jnp.float32),   # running sum_r e_r * x_r
            ],
        ),
        compiler_params=pltpu.CompilerParams(
            dimension_semantics=("arbitrary",),      # sequential reduction over N tiles
            vmem_limit_bytes=32 * 1024 * 1024,       # safe on v5e / v6e / v7x
        ),
        cost_estimate=pl.CostEstimate(
            flops=2 * n_pad * L * D + 2 * n_pad * D + 2 * n_pad * L + 2 * L,
            transcendentals=n_pad * D + 2 * n_pad + 4,
            bytes_accessed=4 * (n_pad * L + L * D + 3 * D + 2 * L + n_pad + 8),
        ),
    )(n_arr, x, w1, b1_row, w2_row, b2_s, wc_row, bc_s)

    y_prob, y_hat, s_raw, s_max, s_den = outs

    # Final normalization of the tiny (1, N) attention vector using the
    # kernel's online-softmax statistics (O(N) elementwise, negligible traffic).
    scores = s_raw.reshape(1, n_pad)[:, :N]
    a = jnp.exp(scores - s_max) / s_den
    return y_prob, y_hat, a


def reference_forward(x, w1, b1, w2, b2, wc, bc):
    h1 = jnp.tanh(x @ w1 + b1)
    scores = h1 @ w2 + b2                  # (N, 1)
    a = jax.nn.softmax(scores.T, axis=1)   # (1, N)
    m = a @ x                              # (1, L)
    y_prob = jax.nn.sigmoid(m @ wc + bc)   # (1, 1)
    y_hat = (y_prob >= 0.5).astype(jnp.float32)
    return y_prob, y_hat, a


if __name__ == "__main__":
    # Bag of N=300 instances (deliberately not a multiple of the tile size so
    # the padding/masking + multi-tile online-softmax path is exercised),
    # feats_size L=512, attention hidden D=128, K=1 — as in the module.
    N, L, D = 300, 512, 128

    key = jax.random.PRNGKey(0)
    k_x, k_w1, k_b1, k_w2, k_b2, k_wc, k_bc = jax.random.split(key, 7)

    x = jax.random.normal(k_x, (N, L), dtype=jnp.float32)
    # Linear weights stored as (in_features, out_features).
    w1 = jax.random.normal(k_w1, (L, D), dtype=jnp.float32) * 0.05
    b1 = jax.random.normal(k_b1, (1, D), dtype=jnp.float32) * 0.05
    w2 = jax.random.normal(k_w2, (D, 1), dtype=jnp.float32) * 0.05
    b2 = jax.random.normal(k_b2, (1, 1), dtype=jnp.float32) * 0.05
    wc = jax.random.normal(k_wc, (L, 1), dtype=jnp.float32) * 0.05
    bc = jax.random.normal(k_bc, (1, 1), dtype=jnp.float32) * 0.05

    y_prob, y_hat, a = abmil_attention_forward(
        x, w1, b1, w2, b2, wc, bc, tile_n=128)
    jax.block_until_ready((y_prob, y_hat, a))

    # Correctness check against the pure-JAX reference.
    y_prob_r, y_hat_r, a_r = reference_forward(x, w1, b1, w2, b2, wc, bc)
    assert a.shape == (1, N)
    assert abs(float(jnp.sum(a)) - 1.0) < 1e-4, "A not normalized"
    assert jnp.allclose(a, a_r, atol=1e-5), "A mismatch"
    assert jnp.allclose(y_prob, y_prob_r, atol=1e-4), "Y_prob mismatch"
    # Y_hat is a hard threshold; only compare when the reference isn't sitting
    # numerically on the 0.5 decision boundary.
    if abs(float(y_prob_r[0, 0]) - 0.5) > 1e-4:
        assert jnp.array_equal(y_hat, y_hat_r), "Y_hat mismatch"

    print("KERNEL_OK")
</pallas_src>

<mosaic_0001>
module attributes {stable_mosaic.version = 11 : i64} {
  func.func @_attention_kernel(%arg0: i32, %arg1: memref<1xi32, #tpu.memory_space<smem>>, %arg2: memref<128x512xf32, #tpu.memory_space<vmem>>, %arg3: memref<512x128xf32, #tpu.memory_space<vmem>>, %arg4: memref<1x128xf32, #tpu.memory_space<vmem>>, %arg5: memref<1x128xf32, #tpu.memory_space<vmem>>, %arg6: memref<1x1xf32, #tpu.memory_space<vmem>>, %arg7: memref<1x512xf32, #tpu.memory_space<vmem>>, %arg8: memref<1x1xf32, #tpu.memory_space<vmem>>, %arg9: memref<1x1xf32, #tpu.memory_space<vmem>>, %arg10: memref<1x1xf32, #tpu.memory_space<vmem>>, %arg11: memref<1x1x128xf32, #tpu.memory_space<vmem>>, %arg12: memref<1x1xf32, #tpu.memory_space<vmem>>, %arg13: memref<1x1xf32, #tpu.memory_space<vmem>>, %arg14: memref<1x1xf32, #tpu.memory_space<vmem>>, %arg15: memref<1x1xf32, #tpu.memory_space<vmem>>, %arg16: memref<1x512xf32, #tpu.memory_space<vmem>>) attributes {dimension_semantics = [#tpu.dimension_semantics<arbitrary>], iteration_bounds = array<i64: 3>, scalar_prefetch = 1 : i64, scratch_operands = 3 : i64, tpu.core_type = #tpu.core_type<tc>, window_params = [{transform_indices = @transform_0, window_bounds = array<i64: 128, 512>}, {pipeline_mode = #tpu.pipeline_mode<synchronous>, transform_indices = @transform_1, window_bounds = array<i64: 512, 128>}, {pipeline_mode = #tpu.pipeline_mode<synchronous>, transform_indices = @transform_2, window_bounds = array<i64: 1, 128>}, {pipeline_mode = #tpu.pipeline_mode<synchronous>, transform_indices = @transform_3, window_bounds = array<i64: 1, 128>}, {pipeline_mode = #tpu.pipeline_mode<synchronous>, transform_indices = @transform_4, window_bounds = array<i64: 1, 1>}, {pipeline_mode = #tpu.pipeline_mode<synchronous>, transform_indices = @transform_5, window_bounds = array<i64: 1, 512>}, {pipeline_mode = #tpu.pipeline_mode<synchronous>, transform_indices = @transform_6, window_bounds = array<i64: 1, 1>}, {pipeline_mode = #tpu.pipeline_mode<synchronous>, transform_indices = @transform_7, window_bounds = array<i64: 1, 1>}, {pipeline_mode = #tpu.pipeline_mode<synchronous>, transform_indices = @transform_8, window_bounds = array<i64: 1, 1>}, {transform_indices = @transform_9, window_bounds = array<i64: 1, 1, 128>}, {pipeline_mode = #tpu.pipeline_mode<synchronous>, transform_indices = @transform_10, window_bounds = array<i64: 1, 1>}, {pipeline_mode = #tpu.pipeline_mode<synchronous>, transform_indices = @transform_11, window_bounds = array<i64: 1, 1>}]} {
    %c0_i32 = arith.constant 0 : i32
    %0 = arith.cmpi eq, %arg0, %c0_i32 : i32
    %1 = arith.extui %0 : i1 to i32
    %c0_i32_0 = arith.constant 0 : i32
    %2 = arith.cmpi ne, %1, %c0_i32_0 : i32
    scf.if %2 {
      %cst_34 = arith.constant -1.000000e+30 : f32
      %67 = vector.broadcast %cst_34 : f32 to vector<1x1xf32>
      %c0_35 = arith.constant 0 : index
      %c0_36 = arith.constant 0 : index
      %68 = vector.load %arg14[%c0_35, %c0_36] : memref<1x1xf32, #tpu.memory_space<vmem>>, vector<1x1xf32>
      tpu.vector_store %arg14[%c0_35, %c0_36], %67 {strides = array<i32>} : memref<1x1xf32, #tpu.memory_space<vmem>>, vector<1x1xf32>,
      %cst_37 = arith.constant 0.000000e+00 : f32
      %69 = vector.broadcast %cst_37 : f32 to vector<1x1xf32>
      %c0_38 = arith.constant 0 : index
      %c0_39 = arith.constant 0 : index
      %70 = vector.load %arg15[%c0_38, %c0_39] : memref<1x1xf32, #tpu.memory_space<vmem>>, vector<1x1xf32>
      tpu.vector_store %arg15[%c0_38, %c0_39], %69 {strides = array<i32>} : memref<1x1xf32, #tpu.memory_space<vmem>>, vector<1x1xf32>,
      %cst_40 = arith.constant 0.000000e+00 : f32
      %71 = vector.broadcast %cst_40 : f32 to vector<1x512xf32>
      %c0_41 = arith.constant 0 : index
      %c0_42 = arith.constant 0 : index
      %72 = vector.load %arg16[%c0_41, %c0_42] : memref<1x512xf32, #tpu.memory_space<vmem>>, vector<1x512xf32>
      tpu.vector_store %arg16[%c0_41, %c0_42], %71 {strides = array<i32>} : memref<1x512xf32, #tpu.memory_space<vmem>>, vector<1x512xf32>,
    } else {
    }
    %c0 = arith.constant 0 : index
    %c0_1 = arith.constant 0 : index
    %3 = vector.load %arg2[%c0, %c0_1] : memref<128x512xf32, #tpu.memory_space<vmem>>, vector<128x512xf32>
    %c0_2 = arith.constant 0 : index
    %c0_3 = arith.constant 0 : index
    %4 = vector.load %arg3[%c0_2, %c0_3] : memref<512x128xf32, #tpu.memory_space<vmem>>, vector<512x128xf32>
    %cst = arith.constant dense<0.000000e+00> : vector<128x128xf32>
    %5 = tpu.matmul %3, %4, %cst {dimension_numbers = #tpu.dot_dimension_numbers<[1], [0], [0], [1], [0, 0, 1, 1], [], []>} : vector<128x512xf32>, vector<512x128xf32>, vector<128x128xf32> -> vector<128x128xf32>
    %c0_4 = arith.constant 0 : index
    %c0_5 = arith.constant 0 : index
    %6 = vector.load %arg4[%c0_4, %c0_5] : memref<1x128xf32, #tpu.memory_space<vmem>>, vector<1x128xf32>
    %7 = vector.broadcast %6 : vector<1x128xf32> to vector<128x128xf32>
    %8 = arith.addf %5, %7 : vector<128x128xf32>
    %9 = math.tanh %8 : vector<128x128xf32>
    %c0_6 = arith.constant 0 : index
    %c0_7 = arith.constant 0 : index
    %10 = vector.load %arg5[%c0_6, %c0_7] : memref<1x128xf32, #tpu.memory_space<vmem>>, vector<1x128xf32>
    %11 = vector.broadcast %10 : vector<1x128xf32> to vector<128x128xf32>
    %12 = arith.mulf %9, %11 : vector<128x128xf32>
    %cst_8 = arith.constant dense<0.000000e+00> : vector<128xf32>
    %13 = vector.multi_reduction <add>, %12, %cst_8 [1] : vector<128x128xf32> to vector<128xf32>
    %14 = vector.shape_cast %13 : vector<128xf32> to vector<128x1xf32>
    %c0_9 = arith.constant 0 : index
    %c0_10 = arith.constant 0 : index
    %15 = vector.load %arg6[%c0_9, %c0_10] : memref<1x1xf32, #tpu.memory_space<vmem>>, vector<1x1xf32>
    %16 = vector.broadcast %15 : vector<1x1xf32> to vector<128x1xf32>
    %17 = arith.addf %14, %16 : vector<128x1xf32>
    %c128_i32 = arith.constant 128 : i32
    %18 = arith.muli %arg0, %c128_i32 : i32
    %19 = tpu.iota {dimensions = array<i32: 0>} : vector<128x1xi32>
    %20 = vector.broadcast %18 : i32 to vector<128x1xi32>
    %21 = arith.addi %20, %19 : vector<128x1xi32>
    %c0_11 = arith.constant 0 : index
    %22 = memref.load %arg1[%c0_11] : memref<1xi32, #tpu.memory_space<smem>>
    %23 = vector.broadcast %22 : i32 to vector<128x1xi32>
    %24 = arith.cmpi slt, %21, %23 : vector<128x1xi32>
    %cst_12 = arith.constant -1.000000e+30 : f32
    %25 = vector.broadcast %cst_12 : f32 to vector<128x1xf32>
    %26 = arith.select %24, %17, %25 : vector<128x1xi1>, vector<128x1xf32>
    %c0_13 = arith.constant 0 : index
    %c0_14 = arith.constant 0 : index
    %27 = vector.load %arg14[%c0_13, %c0_14] : memref<1x1xf32, #tpu.memory_space<vmem>>, vector<1x1xf32>
    %cst_15 = arith.constant dense<0xFF800000> : vector<1xf32>
    %28 = vector.multi_reduction <maximumf>, %26, %cst_15 [0] : vector<128x1xf32> to vector<1xf32>
    %29 = vector.shape_cast %28 : vector<1xf32> to vector<1x1xf32>
    %30 = arith.maximumf %27, %29 : vector<1x1xf32>
    %31 = arith.subf %27, %30 : vector<1x1xf32>
    %32 = math.exp %31 : vector<1x1xf32>
    %33 = vector.broadcast %30 : vector<1x1xf32> to vector<128x1xf32>
    %34 = arith.subf %26, %33 : vector<128x1xf32>
    %35 = math.exp %34 : vector<128x1xf32>
    %c0_16 = arith.constant 0 : index
    %c0_17 = arith.constant 0 : index
    %36 = vector.load %arg15[%c0_16, %c0_17] : memref<1x1xf32, #tpu.memory_space<vmem>>, vector<1x1xf32>
    %37 = arith.mulf %32, %36 : vector<1x1xf32>
    %cst_18 = arith.constant dense<0.000000e+00> : vector<1xf32>
    %38 = vector.multi_reduction <add>, %35, %cst_18 [0] : vector<128x1xf32> to vector<1xf32>
    %39 = vector.shape_cast %38 : vector<1xf32> to vector<1x1xf32>
    %40 = arith.addf %37, %39 : vector<1x1xf32>
    %c0_19 = arith.constant 0 : index
    %c0_20 = arith.constant 0 : index
    %41 = vector.load %arg15[%c0_19, %c0_20] : memref<1x1xf32, #tpu.memory_space<vmem>>, vector<1x1xf32>
    tpu.vector_store %arg15[%c0_19, %c0_20], %40 {strides = array<i32>} : memref<1x1xf32, #tpu.memory_space<vmem>>, vector<1x1xf32>,
    %c0_21 = arith.constant 0 : index
    %c0_22 = arith.constant 0 : index
    %42 = vector.load %arg16[%c0_21, %c0_22] : memref<1x512xf32, #tpu.memory_space<vmem>>, vector<1x512xf32>
    %43 = vector.broadcast %32 : vector<1x1xf32> to vector<1x512xf32>
    %44 = arith.mulf %43, %42 : vector<1x512xf32>
    %45 = vector.broadcast %35 : vector<128x1xf32> to vector<128x512xf32>
    %46 = arith.mulf %45, %3 : vector<128x512xf32>
    %cst_23 = arith.constant dense<0.000000e+00> : vector<512xf32>
    %47 = vector.multi_reduction <add>, %46, %cst_23 [0] : vector<128x512xf32> to vector<512xf32>
    %48 = vector.shape_cast %47 : vector<512xf32> to vector<1x512xf32>
    %49 = arith.addf %44, %48 : vector<1x512xf32>
    %c0_24 = arith.constant 0 : index
    %c0_25 = arith.constant 0 : index
    %50 = vector.load %arg16[%c0_24, %c0_25] : memref<1x512xf32, #tpu.memory_space<vmem>>, vector<1x512xf32>
    tpu.vector_store %arg16[%c0_24, %c0_25], %49 {strides = array<i32>} : memref<1x512xf32, #tpu.memory_space<vmem>>, vector<1x512xf32>,
    %c0_26 = arith.constant 0 : index
    %c0_27 = arith.constant 0 : index
    %51 = vector.load %arg14[%c0_26, %c0_27] : memref<1x1xf32, #tpu.memory_space<vmem>>, vector<1x1xf32>
    tpu.vector_store %arg14[%c0_26, %c0_27], %30 {strides = array<i32>} : memref<1x1xf32, #tpu.memory_space<vmem>>, vector<1x1xf32>,
    %52 = tpu.iota {dimensions = array<i32: 0>} : vector<128x128xi32>
    %53 = tpu.iota {dimensions = array<i32: 1>} : vector<128x128xi32>
    %54 = arith.cmpi eq, %52, %53 : vector<128x128xi32>
    %cst_28 = arith.constant 0.000000e+00 : f32
    %55 = vector.shape_cast %26 : vector<128x1xf32> to vector<128x1xf32>
    %56 = vector.broadcast %55 : vector<128x1xf32> to vector<128x128xf32>
    %57 = vector.broadcast %cst_28 : f32 to vector<128x128xf32>
    %58 = arith.select %54, %56, %57 : vector<128x128xi1>, vector<128x128xf32>
    %cst_29 = arith.constant dense<0.000000e+00> : vector<128xf32>
    %59 = vector.multi_reduction <add>, %58, %cst_29 [0] : vector<128x128xf32> to vector<128xf32>
    %60 = vector.shape_cast %59 : vector<128xf32> to vector<1x128xf32>
    %c0_30 = arith.constant 0 : index
    %c0_31 = arith.constant 0 : index
    %c0_32 = arith.constant 0 : index
    %61 = vector.load %arg11[%c0_30, %c0_31, %c0_32] : memref<1x1x128xf32, #tpu.memory_space<vmem>>, vector<1x1x128xf32>
    %62 = vector.shape_cast %61 : vector<1x1x128xf32> to vector<1x128xf32>
    %63 = vector.shape_cast %60 : vector<1x128xf32> to vector<1x1x128xf32>
    tpu.vector_store %arg11[%c0_30, %c0_31, %c0_32], %63 {strides = array<i32>} : memref<1x1x128xf32, #tpu.memory_space<vmem>>, vector<1x1x128xf32>,
    %c2_i32 = arith.constant 2 : i32
    %64 = arith.cmpi eq, %arg0, %c2_i32 : i32
    %65 = arith.extui %64 : i1 to i32
    %c0_i32_33 = arith.constant 0 : i32
    %66 = arith.cmpi ne, %65, %c0_i32_33 : i32
    scf.if %66 {
      %c0_34 = arith.constant 0 : index
      %c0_35 = arith.constant 0 : index
      %67 = vector.load %arg15[%c0_34, %c0_35] : memref<1x1xf32, #tpu.memory_space<vmem>>, vector<1x1xf32>
      %cst_36 = arith.constant 1.000000e+00 : f32
      %68 = vector.broadcast %cst_36 : f32 to vector<1x1xf32>
      %69 = arith.divf %68, %67 : vector<1x1xf32>
      %c0_37 = arith.constant 0 : index
      %c0_38 = arith.constant 0 : index
      %70 = vector.load %arg16[%c0_37, %c0_38] : memref<1x512xf32, #tpu.memory_space<vmem>>, vector<1x512xf32>
      %71 = vector.broadcast %69 : vector<1x1xf32> to vector<1x512xf32>
      %72 = arith.mulf %70, %71 : vector<1x512xf32>
      %c0_39 = arith.constant 0 : index
      %c0_40 = arith.constant 0 : index
      %73 = vector.load %arg7[%c0_39, %c0_40] : memref<1x512xf32, #tpu.memory_space<vmem>>, vector<1x512xf32>
      %74 = arith.mulf %72, %73 : vector<1x512xf32>
      %cst_41 = arith.constant dense<0.000000e+00> : vector<1xf32>
      %75 = vector.multi_reduction <add>, %74, %cst_41 [1] : vector<1x512xf32> to vector<1xf32>
      %76 = vector.shape_cast %75 : vector<1xf32> to vector<1x1xf32>
      %c0_42 = arith.constant 0 : index
      %c0_43 = arith.constant 0 : index
      %77 = vector.load %arg8[%c0_42, %c0_43] : memref<1x1xf32, #tpu.memory_space<vmem>>, vector<1x1xf32>
      %78 = arith.addf %76, %77 : vector<1x1xf32>
      %79 = arith.negf %78 : vector<1x1xf32>
      %80 = math.exp %79 : vector<1x1xf32>
      %cst_44 = arith.constant 1.000000e+00 : f32
      %81 = vector.broadcast %cst_44 : f32 to vector<1x1xf32>
      %82 = arith.addf %81, %80 : vector<1x1xf32>
      %83 = arith.divf %81, %82 : vector<1x1xf32>
      %c0_45 = arith.constant 0 : index
      %c0_46 = arith.constant 0 : index
      %84 = vector.load %arg9[%c0_45, %c0_46] : memref<1x1xf32, #tpu.memory_space<vmem>>, vector<1x1xf32>
      tpu.vector_store %arg9[%c0_45, %c0_46], %83 {strides = array<i32>} : memref<1x1xf32, #tpu.memory_space<vmem>>, vector<1x1xf32>,
      %cst_47 = arith.constant 5.000000e-01 : f32
      %85 = vector.broadcast %cst_47 : f32 to vector<1x1xf32>
      %86 = arith.cmpf oge, %83, %85 : vector<1x1xf32>
      %87 = arith.extui %86 : vector<1x1xi1> to vector<1x1xi32>
      %88 = arith.sitofp %87 : vector<1x1xi32> to vector<1x1xf32>
      %c0_48 = arith.constant 0 : index
      %c0_49 = arith.constant 0 : index
      %89 = vector.load %arg10[%c0_48, %c0_49] : memref<1x1xf32, #tpu.memory_space<vmem>>, vector<1x1xf32>
      tpu.vector_store %arg10[%c0_48, %c0_49], %88 {strides = array<i32>} : memref<1x1xf32, #tpu.memory_space<vmem>>, vector<1x1xf32>,
      %c0_50 = arith.constant 0 : index
      %c0_51 = arith.constant 0 : index
      %90 = vector.load %arg14[%c0_50, %c0_51] : memref<1x1xf32, #tpu.memory_space<vmem>>, vector<1x1xf32>
      %c0_52 = arith.constant 0 : index
      %c0_53 = arith.constant 0 : index
      %91 = vector.load %arg12[%c0_52, %c0_53] : memref<1x1xf32, #tpu.memory_space<vmem>>, vector<1x1xf32>
      tpu.vector_store %arg12[%c0_52, %c0_53], %90 {strides = array<i32>} : memref<1x1xf32, #tpu.memory_space<vmem>>, vector<1x1xf32>,
      %c0_54 = arith.constant 0 : index
      %c0_55 = arith.constant 0 : index
      %92 = vector.load %arg15[%c0_54, %c0_55] : memref<1x1xf32, #tpu.memory_space<vmem>>, vector<1x1xf32>
      %c0_56 = arith.constant 0 : index
      %c0_57 = arith.constant 0 : index
      %93 = vector.load %arg13[%c0_56, %c0_57] : memref<1x1xf32, #tpu.memory_space<vmem>>, vector<1x1xf32>
      tpu.vector_store %arg13[%c0_56, %c0_57], %92 {strides = array<i32>} : memref<1x1xf32, #tpu.memory_space<vmem>>, vector<1x1xf32>,
    } else {
    }
    return
  }
  func.func @transform_0(%arg0: i32, %arg1: memref<1xi32, #tpu.memory_space<smem>>) -> (i32, i32) {
    %c0_i32 = arith.constant 0 : i32
    %c0_i32_0 = arith.constant 0 : i32
    return %arg0, %c0_i32 : i32, i32
  }
  func.func @transform_1(%arg0: i32, %arg1: memref<1xi32, #tpu.memory_space<smem>>) -> (i32, i32) {
    %c0_i32 = arith.constant 0 : i32
    %c0_i32_0 = arith.constant 0 : i32
    %c0_i32_1 = arith.constant 0 : i32
    return %c0_i32, %c0_i32_0 : i32, i32
  }
  func.func @transform_2(%arg0: i32, %arg1: memref<1xi32, #tpu.memory_space<smem>>) -> (i32, i32) {
    %c0_i32 = arith.constant 0 : i32
    %c0_i32_0 = arith.constant 0 : i32
    %c0_i32_1 = arith.constant 0 : i32
    return %c0_i32, %c0_i32_0 : i32, i32
  }
  func.func @transform_3(%arg0: i32, %arg1: memref<1xi32, #tpu.memory_space<smem>>) -> (i32, i32) {
    %c0_i32 = arith.constant 0 : i32
    %c0_i32_0 = arith.constant 0 : i32
    %c0_i32_1 = arith.constant 0 : i32
    return %c0_i32, %c0_i32_0 : i32, i32
  }
  func.func @transform_4(%arg0: i32, %arg1: memref<1xi32, #tpu.memory_space<smem>>) -> (i32, i32) {
    %c0_i32 = arith.constant 0 : i32
    %c0_i32_0 = arith.constant 0 : i32
    %c0_i32_1 = arith.constant 0 : i32
    return %c0_i32, %c0_i32_0 : i32, i32
  }
  func.func @transform_5(%arg0: i32, %arg1: memref<1xi32, #tpu.memory_space<smem>>) -> (i32, i32) {
    %c0_i32 = arith.constant 0 : i32
    %c0_i32_0 = arith.constant 0 : i32
    %c0_i32_1 = arith.constant 0 : i32
    return %c0_i32, %c0_i32_0 : i32, i32
  }
  func.func @transform_6(%arg0: i32, %arg1: memref<1xi32, #tpu.memory_space<smem>>) -> (i32, i32) {
    %c0_i32 = arith.constant 0 : i32
    %c0_i32_0 = arith.constant 0 : i32
    %c0_i32_1 = arith.constant 0 : i32
    return %c0_i32, %c0_i32_0 : i32, i32
  }
  func.func @transform_7(%arg0: i32, %arg1: memref<1xi32, #tpu.memory_space<smem>>) -> (i32, i32) {
    %c0_i32 = arith.constant 0 : i32
    %c0_i32_0 = arith.constant 0 : i32
    %c0_i32_1 = arith.constant 0 : i32
    return %c0_i32, %c0_i32_0 : i32, i32
  }
  func.func @transform_8(%arg0: i32, %arg1: memref<1xi32, #tpu.memory_space<smem>>) -> (i32, i32) {
    %c0_i32 = arith.constant 0 : i32
    %c0_i32_0 = arith.constant 0 : i32
    %c0_i32_1 = arith.constant 0 : i32
    return %c0_i32, %c0_i32_0 : i32, i32
  }
  func.func @transform_9(%arg0: i32, %arg1: memref<1xi32, #tpu.memory_space<smem>>) -> (i32, i32, i32) {
    %c0_i32 = arith.constant 0 : i32
    %c0_i32_0 = arith.constant 0 : i32
    %c0_i32_1 = arith.constant 0 : i32
    return %arg0, %c0_i32, %c0_i32_0 : i32, i32, i32
  }
  func.func @transform_10(%arg0: i32, %arg1: memref<1xi32, #tpu.memory_space<smem>>) -> (i32, i32) {
    %c0_i32 = arith.constant 0 : i32
    %c0_i32_0 = arith.constant 0 : i32
    %c0_i32_1 = arith.constant 0 : i32
    return %c0_i32, %c0_i32_0 : i32, i32
  }
  func.func @transform_11(%arg0: i32, %arg1: memref<1xi32, #tpu.memory_space<smem>>) -> (i32, i32) {
    %c0_i32 = arith.constant 0 : i32
    %c0_i32_0 = arith.constant 0 : i32
    %c0_i32_1 = arith.constant 0 : i32
    return %c0_i32, %c0_i32_0 : i32, i32
  }
}

</mosaic_0001>

<bundles_post_ra>
// kernel: abmil_attention_forward.1
= control target key start
LH: loop header
LB: loop body
LE: loop exit
PB: predicated region body
PF: predicated region fallthrough
CT: control target
= control target key end

     0   :  { %s3254_s0 = inlined_call_operand.<no memory space> [shape: s32[1], index: 0, kind: input, shape index: {}]   ;;  %s3255_s1 = inlined_call_operand.vmem [shape: f32[384,512], index: 1, kind: input, shape index: {}]   ;;  %s3256_s2 = inlined_call_operand.vmem [shape: f32[512,128], index: 2, kind: input, shape index: {}]   ;;  %s3257_s3 = inlined_call_operand.vmem [shape: f32[1,128], index: 3, kind: input, shape index: {}]   ;;  %s3258_s4 = inlined_call_operand.vmem [shape: f32[1,128], index: 4, kind: input, shape index: {}]   ;;  %s3259_s5 = inlined_call_operand.<no memory space> [shape: f32[1,1], index: 5, kind: input, shape index: {}]   ;;  %s3260_s6 = inlined_call_operand.vmem [shape: f32[1,512], index: 6, kind: input, shape index: {}]   ;;  %s3261_s8 = inlined_call_operand.hbm [shape: f32[1,1], index: 8, kind: output, shape index: {0}]   ;;  %s3262_s9 = inlined_call_operand.hbm [shape: f32[1,1], index: 9, kind: output, shape index: {1}]   ;;  %s3263_s10 = inlined_call_operand.vmem [shape: f32[3,1,128], index: 10, kind: output, shape index: {2}]   ;;  %s3264_s11 = inlined_call_operand.hbm [shape: f32[1,1], index: 11, kind: output, shape index: {3}]   ;;  %s3265_s12 = inlined_call_operand.hbm [shape: f32[1,1], index: 12, kind: output, shape index: {4}]   ;;  %s3266_s7 = inlined_call_operand.<no memory space> [shape: f32[1,1], index: 7, kind: input, shape index: {}]  }
   0x1   :  { %18 = sst [smem:[#allocation6]] %s3254_s0  ;;  %v19_v0 = vstv %s3259_s5  ;;  %v21_v1 = vstv %s3266_s7 }
   0x2   :  { %20 = vst [vmem:[#allocation7] sm:$0x1] %v19_v0  ;;  %22 = vst [vmem:[#allocation8] sm:$0x1] %v21_v1 }
   0x3   :  { %23 = vsyncpa [#allocation10], 0 }
   0x4   :  { %24 = vsyncpa [#allocation12], 0 }
   0x5   :  { %25 = vsyncpa [#allocation15], 0  ;;  %s2380_s27 = smov 0  }
   0x6 LB: > { %s2386_s0 = sadd.s32 4294967295, %s2294_s27   ;;  %p1744_p0 = scmp.ge.s32.totalorder %s2294_s27, 1  ;;  %s2294_s27 = sphi %s2380_s27, %s31_s27  }
   0x7   : > { %p337_p1 = scmp.lt.s32.totalorder %s2294_s27, 4 }
   0x9   : > { %p338_p2 = pnand %p1744_p0, %p337_p1 }
   0xa   : > { %s1745_s5 = sshll.u32 (!%p338_p2), %s2386_s0, 4  ;;  %p383_p3 = scmp.lt.s32.totalorder (!%p338_p2), %s2386_s0, 2 }
   0xb   : > { %341 = sbr.rel (%p338_p2) target bundleno = 1140 (0x474), region = 48  ;;  %p377_p4 = scmp.lt.s32.totalorder (!%p338_p2), %s1745_s5, 47 }
   0xc   : > { %p1748_p5 = scmp.ne.s32.totalorder (!%p338_p2), %s2386_s0, 0 }
  0x12   : > { %s2393_s7 = scalar_select %p383_p3, %s2386_s0, 2 }
  0x13   : > { %s3268_s5 = smov (!%p377_p4, %s1745_s5), 47  ;;  %389 = sbr.rel (%p1748_p5) target bundleno = 26 (0x1a), region = 52 }
  0x14   : > { %s385_s30 = scalar_lea.vmem %s3263_s10, %s2393_s7  ;;  %s1766_s13 = sshll.u32 %s3268_s5, 5  ;;  %vm390_vm0 = vcmask (!%p1748_p5), 0   ;;  %v393_v2 = vlaneseq (!%p1748_p5)  ;;  %v2296_v3 = vmov (!%p1748_p5), -1e+30   ;;  %v2297_v4 = vmov (!%p1748_p5), 0.0  }
  0x15   : > { %s2402_s16 = scalar_lea.vmem %s3255_s1, %s1766_s13  ;;  %391 = vst.msk [vmem:[#allocation2] sm:$0x1] (!%p1748_p5), %vm390_vm0, %v2296_v3  ;;  %392 = vst.msk [vmem:[#allocation3] sm:$0x1] (!%p1748_p5), %vm390_vm0, %v2297_v4 }
  0x16   : > { %vm395_vm1 = vcmp.lt.s32.totalorder (!%p1748_p5), %v393_v2, 512 }
  0x17   : > { %397 = vst.msk [vmem:[#allocation4] sm:$0xf] (!%p1748_p5), %vm395_vm1, %v2297_v4 }
  0x1a PF: > { %v478_v5 = vld [vmem:[%s3256_s2 + $0x80] sm:$0xff]  ;;  %v479_v6 = vld [vmem:[%s3256_s2 + $0x88] sm:$0xff]  ;;  %v480_v16 = vld [vmem:[%s3256_s2 + $0x90] sm:$0xff]  ;;  %s952_s21 = sld [smem:[#allocation6]]  ;;  %s1752_s22 = sshll.u32 %s2386_s0, 7  ;;  %vm987_vm13 = vcmask 7168  }
  0x1b   : > { %v462_v7 = vld [vmem:[%s3256_s2] sm:$0xff]  ;;  %v1927_v8 = vpack.c.bf16 %v479_v6, %v478_v5  ;;  %v463_v9 = vld [vmem:[%s3256_s2 + $0x8] sm:$0xff]  ;;  %v481_v18 = vld [vmem:[%s3256_s2 + $0x98] sm:$0xff]  ;;  %p1753_p6 = scmp.ne.s32.totalorder %s2386_s0, 2 }
  0x1c   : > { %v510_v10 = vld [vmem:[%s3256_s2 + $0x180] sm:$0xff]  ;;  %v511_v11 = vld [vmem:[%s3256_s2 + $0x188] sm:$0xff]  ;;  %v1929_v12 = vpack.c.bf16 %v463_v9, %v462_v7  ;;  %v464_v19 = vld [vmem:[%s3256_s2 + $0x10] sm:$0xff]  ;;  %v1931_v21 = vpack.c.bf16 %v481_v18, %v480_v16 }
  0x1d   : > { %v1959_v13 = vpack.c.bf16 %v511_v11, %v510_v10  ;;  %v494_v14 = vld [vmem:[%s3256_s2 + $0x100] sm:$0xff]  ;;  %v495_v15 = vld [vmem:[%s3256_s2 + $0x108] sm:$0xff]  ;;  %1928 = vmatprep.subr.bf16.mxu0 %v1927_v8  ;;  %v465_v20 = vld [vmem:[%s3256_s2 + $0x18] sm:$0xff] }
  0x1e   : > { %v1961_v17 = vpack.c.bf16 %v495_v15, %v494_v14  ;;  %1930 = vmatpush3.bf16.msra.mxu0 %v1929_v12  ;;  %v1933_v22 = vpack.c.bf16 %v465_v20, %v464_v19  ;;  %v512_v23 = vld [vmem:[%s3256_s2 + $0x190] sm:$0xff]  ;;  %v513_v24 = vld [vmem:[%s3256_s2 + $0x198] sm:$0xff]  ;;  %v482_v28 = vld [vmem:[%s3256_s2 + $0xa0] sm:$0xff] }
  0x1f   : > { %1960 = vmatprep.subr.bf16.mxu1 %v1959_v13  ;;  %v496_v25 = vld [vmem:[%s3256_s2 + $0x110] sm:$0xff]  ;;  %v1963_v26 = vpack.c.bf16 %v513_v24, %v512_v23  ;;  %v497_v27 = vld [vmem:[%s3256_s2 + $0x118] sm:$0xff]  ;;  %v483_v29 = vld [vmem:[%s3256_s2 + $0xa8] sm:$0xff]  ;;  %1932 = vmatprep.subr.bf16.mxu0 %v1931_v21 }
  0x20   : > { %1962 = vmatpush3.bf16.msra.mxu1 %v1961_v17  ;;  %v1965_v30 = vpack.c.bf16 %v497_v27, %v496_v25  ;;  %v1935_v31 = vpack.c.bf16 %v483_v29, %v482_v28  ;;  %v466_v32 = vld [vmem:[%s3256_s2 + $0x20] sm:$0xff]  ;;  %v467_v33 = vld [vmem:[%s3256_s2 + $0x28] sm:$0xff]  ;;  %v484_v40 = vld [vmem:[%s3256_s2 + $0xb0] sm:$0xff] }
  0x21   : > { %v514_v34 = vld [vmem:[%s3256_s2 + $0x1a0] sm:$0xff]  ;;  %1964 = vmatprep.subr.bf16.mxu1 %v1963_v26  ;;  %v515_v35 = vld [vmem:[%s3256_s2 + $0x1a8] sm:$0xff]  ;;  %v1937_v38 = vpack.c.bf16 %v467_v33, %v466_v32  ;;  %v485_v41 = vld [vmem:[%s3256_s2 + $0xb8] sm:$0xff] }
  0x22   : > { %v498_v36 = vld [vmem:[%s3256_s2 + $0x120] sm:$0xff]  ;;  %v499_v37 = vld [vmem:[%s3256_s2 + $0x128] sm:$0xff]  ;;  %1934 = vmatpush3.bf16.msra.mxu0 %v1933_v22  ;;  %v1967_v39 = vpack.c.bf16 %v515_v35, %v514_v34  ;;  %v468_v42 = vld [vmem:[%s3256_s2 + $0x30] sm:$0xff]  ;;  %v1939_v44 = vpack.c.bf16 %v485_v41, %v484_v40 }
  0x23   : > { %1936 = vmatprep.subr.bf16.mxu0 %v1935_v31  ;;  %v1969_v43 = vpack.c.bf16 %v499_v37, %v498_v36  ;;  %v469_v45 = vld [vmem:[%s3256_s2 + $0x38] sm:$0xff]  ;;  %v516_v46 = vld [vmem:[%s3256_s2 + $0x1b0] sm:$0xff]  ;;  %v486_v51 = vld [vmem:[%s3256_s2 + $0xc0] sm:$0xff] }
  0x24   : > { %1966 = vmatpush3.bf16.msra.mxu1 %v1965_v30  ;;  %v517_v47 = vld [vmem:[%s3256_s2 + $0x1b8] sm:$0xff]  ;;  %v500_v49 = vld [vmem:[%s3256_s2 + $0x130] sm:$0xff]  ;;  %v487_v52 = vld [vmem:[%s3256_s2 + $0xc8] sm:$0xff]  ;;  %v1941_v53 = vpack.c.bf16 %v469_v45, %v468_v42 }
  0x25   : > { %1968 = vmatprep.subr.bf16.mxu1 %v1967_v39  ;;  %v1971_v48 = vpack.c.bf16 %v517_v47, %v516_v46  ;;  %v501_v50 = vld [vmem:[%s3256_s2 + $0x138] sm:$0xff]  ;;  %v518_v54 = vld [vmem:[%s3256_s2 + $0x1c0] sm:$0xff]  ;;  %v519_v55 = vld [vmem:[%s3256_s2 + $0x1c8] sm:$0xff]  ;;  %v1943_v57 = vpack.c.bf16 %v487_v52, %v486_v51 }
  0x26   : > { %1938 = vmatpush3.bf16.msra.mxu0 %v1937_v38  ;;  %v1973_v56 = vpack.c.bf16 %v501_v50, %v500_v49  ;;  %v470_v58 = vld [vmem:[%s3256_s2 + $0x40] sm:$0xff]  ;;  %v471_v59 = vld [vmem:[%s3256_s2 + $0x48] sm:$0xff]  ;;  %v1975_v61 = vpack.c.bf16 %v519_v55, %v518_v54  ;;  %v488_v63 = vld [vmem:[%s3256_s2 + $0xd0] sm:$0xff] }
  0x27   : > { %1940 = vmatprep.subr.bf16.mxu0 %v1939_v44  ;;  %v502_v60 = vld [vmem:[%s3256_s2 + $0x140] sm:$0xff]  ;;  %v503_v62 = vld [vmem:[%s3256_s2 + $0x148] sm:$0xff]  ;;  %v489_v0 = vld [vmem:[%s3256_s2 + $0xd8] sm:$0xff]  ;;  %v1945_v3 = vpack.c.bf16 %v471_v59, %v470_v58 }
  0x28   : > { %1970 = vmatpush3.bf16.msra.mxu1 %v1969_v43  ;;  %v520_v1 = vld [vmem:[%s3256_s2 + $0x1d0] sm:$0xff]  ;;  %v521_v2 = vld [vmem:[%s3256_s2 + $0x1d8] sm:$0xff]  ;;  %v1977_v4 = vpack.c.bf16 %v503_v62, %v502_v60  ;;  %v1947_v5 = vpack.c.bf16 %v489_v0, %v488_v63  ;;  %v490_v11 = vld [vmem:[%s3256_s2 + $0xe0] sm:$0xff] }
  0x29   : > { %1972 = vmatprep.subr.bf16.mxu1 %v1971_v48  ;;  %v472_v6 = vld [vmem:[%s3256_s2 + $0x50] sm:$0xff]  ;;  %v473_v7 = vld [vmem:[%s3256_s2 + $0x58] sm:$0xff]  ;;  %v1979_v9 = vpack.c.bf16 %v521_v2, %v520_v1  ;;  %v491_v12 = vld [vmem:[%s3256_s2 + $0xe8] sm:$0xff] }
  0x2a   : > { %1942 = vmatpush3.bf16.msra.mxu0 %v1941_v53  ;;  %v504_v8 = vld [vmem:[%s3256_s2 + $0x150] sm:$0xff]  ;;  %v505_v10 = vld [vmem:[%s3256_s2 + $0x158] sm:$0xff]  ;;  %v522_v13 = vld [vmem:[%s3256_s2 + $0x1e0] sm:$0xff]  ;;  %v1949_v15 = vpack.c.bf16 %v473_v7, %v472_v6  ;;  %v1951_v19 = vpack.c.bf16 %v491_v12, %v490_v11 }
  0x2b   : > { %1944 = vmatprep.subr.bf16.mxu0 %v1943_v57  ;;  %v523_v14 = vld [vmem:[%s3256_s2 + $0x1e8] sm:$0xff]  ;;  %v474_v16 = vld [vmem:[%s3256_s2 + $0x60] sm:$0xff]  ;;  %v1981_v18 = vpack.c.bf16 %v505_v10, %v504_v8  ;;  %v492_v24 = vld [vmem:[%s3256_s2 + $0xf0] sm:$0xff] }
  0x2c   : > { %1974 = vmatpush3.bf16.msra.mxu1 %v1973_v56  ;;  %v475_v17 = vld [vmem:[%s3256_s2 + $0x68] sm:$0xff]  ;;  %v506_v20 = vld [vmem:[%s3256_s2 + $0x160] sm:$0xff]  ;;  %v1983_v23 = vpack.c.bf16 %v523_v14, %v522_v13  ;;  %v493_v25 = vld [vmem:[%s3256_s2 + $0xf8] sm:$0xff] }
  0x2d   : > { %1976 = vmatprep.subr.bf16.mxu1 %v1975_v61  ;;  %v507_v21 = vld [vmem:[%s3256_s2 + $0x168] sm:$0xff]  ;;  %v401_v26 = vld [vmem:[%s2402_s16 + $0x18] sm:$0xff]  ;;  %v524_v27 = vld [vmem:[%s3256_s2 + $0x1f0] sm:$0xff]  ;;  %v1953_v29 = vpack.c.bf16 %v475_v17, %v474_v16  ;;  %v1955_v31 = vpack.c.bf16 %v493_v25, %v492_v24 }
  0x2e   : > { %1946 = vmatpush3.bf16.msra.mxu0 %v1945_v3  ;;  %v399_v22 = vld [vmem:[%s2402_s16 + $0x8] sm:$0xff]  ;;  %v525_v28 = vld [vmem:[%s3256_s2 + $0x1f8] sm:$0xff]  ;;  %742 = vmatprep.mubr.f32.mxu1 %v401_v26  ;;  %v1985_v30 = vpack.c.bf16 %v507_v21, %v506_v20  ;;  %v476_v32 = vld [vmem:[%s3256_s2 + $0x70] sm:$0xff] }
  0x2f   : > { %1948 = vmatprep.subr.bf16.mxu0 %v1947_v5  ;;  %597 = vmatprep.mubr.f32.mxu0 %v399_v22  ;;  %v477_v33 = vld [vmem:[%s3256_s2 + $0x78] sm:$0xff]  ;;  %v1987_v34 = vpack.c.bf16 %v525_v28, %v524_v27  ;;  %v508_v35 = vld [vmem:[%s3256_s2 + $0x170] sm:$0xff]  ;;  %v398_v39 = vld [vmem:[%s2402_s16] sm:$0xff] }
  0x30   : > { %1978 = vmatpush3.bf16.msra.mxu1 %v1977_v4  ;;  %v509_v36 = vld [vmem:[%s3256_s2 + $0x178] sm:$0xff]  ;;  %v1957_v37 = vpack.c.bf16 %v477_v33, %v476_v32  ;;  %v400_v40 = vld [vmem:[%s2402_s16 + $0x10] sm:$0xff]  ;;  %v403_v41 = vld [vmem:[%s2402_s16 + $0x28] sm:$0xff] }
  0x31   : > { %1980 = vmatprep.subr.bf16.mxu1 %v1979_v9  ;;  %v1989_v38 = vpack.c.bf16 %v509_v36, %v508_v35  ;;  %v405_v42 = vld [vmem:[%s2402_s16 + $0x38] sm:$0xff]  ;;  %v402_v43 = vld [vmem:[%s2402_s16 + $0x20] sm:$0xff]  ;;  %v404_v44 = vld [vmem:[%s2402_s16 + $0x30] sm:$0xff] }
  0x32   : > { %1950 = vmatpush3.bf16.msra.mxu0 %v1949_v15  ;;  %v407_v45 = vld [vmem:[%s2402_s16 + $0x48] sm:$0xff]  ;;  %v409_v46 = vld [vmem:[%s2402_s16 + $0x58] sm:$0xff]  ;;  %v406_v47 = vld [vmem:[%s2402_s16 + $0x40] sm:$0xff] }
  0x33   : > { %1952 = vmatprep.subr.bf16.mxu0 %v1951_v19  ;;  %v408_v48 = vld [vmem:[%s2402_s16 + $0x50] sm:$0xff]  ;;  %v411_v49 = vld [vmem:[%s2402_s16 + $0x68] sm:$0xff]  ;;  %v413_v50 = vld [vmem:[%s2402_s16 + $0x78] sm:$0xff] }
  0x34   : > { %1982 = vmatpush3.bf16.msra.mxu1 %v1981_v18  ;;  %v410_v51 = vld [vmem:[%s2402_s16 + $0x60] sm:$0xff]  ;;  %v412_v52 = vld [vmem:[%s2402_s16 + $0x70] sm:$0xff]  ;;  %v415_v53 = vld [vmem:[%s2402_s16 + $0x88] sm:$0xff] }
  0x35   : > { %1984 = vmatprep.subr.bf16.mxu1 %v1983_v23  ;;  %v417_v54 = vld [vmem:[%s2402_s16 + $0x98] sm:$0xff]  ;;  %v414_v55 = vld [vmem:[%s2402_s16 + $0x80] sm:$0xff]  ;;  %v416_v56 = vld [vmem:[%s2402_s16 + $0x90] sm:$0xff] }
  0x36   : > { %1954 = vmatpush3.bf16.msra.mxu0 %v1953_v29  ;;  %v419_v57 = vld [vmem:[%s2402_s16 + $0xa8] sm:$0xff]  ;;  %v421_v58 = vld [vmem:[%s2402_s16 + $0xb8] sm:$0xff]  ;;  %v418_v59 = vld [vmem:[%s2402_s16 + $0xa0] sm:$0xff] }
  0x37   : > { %1956 = vmatprep.subr.bf16.mxu0 %v1955_v31  ;;  %v420_v60 = vld [vmem:[%s2402_s16 + $0xb0] sm:$0xff]  ;;  %v423_v61 = vld [vmem:[%s2402_s16 + $0xc8] sm:$0xff]  ;;  %v425_v62 = vld [vmem:[%s2402_s16 + $0xd8] sm:$0xff] }
  0x38   : > { %1986 = vmatpush3.bf16.msra.mxu1 %v1985_v30  ;;  %v422_v63 = vld [vmem:[%s2402_s16 + $0xc0] sm:$0xff]  ;;  %v424_v0 = vld [vmem:[%s2402_s16 + $0xd0] sm:$0xff]  ;;  %v427_v1 = vld [vmem:[%s2402_s16 + $0xe8] sm:$0xff] }
  0x39   : > { %1988 = vmatprep.subr.bf16.mxu1 %v1987_v34  ;;  %v429_v2 = vld [vmem:[%s2402_s16 + $0xf8] sm:$0xff]  ;;  %v426_v3 = vld [vmem:[%s2402_s16 + $0xe0] sm:$0xff]  ;;  %v428_v4 = vld [vmem:[%s2402_s16 + $0xf0] sm:$0xff] }
  0x3a   : > { %1958 = vmatpush3.bf16.msra.mxu0 %v1957_v37  ;;  %v431_v5 = vld [vmem:[%s2402_s16 + $0x108] sm:$0xff]  ;;  %v433_v6 = vld [vmem:[%s2402_s16 + $0x118] sm:$0xff]  ;;  %v430_v7 = vld [vmem:[%s2402_s16 + $0x100] sm:$0xff] }
  0x3b   : > { %v432_v8 = vld [vmem:[%s2402_s16 + $0x110] sm:$0xff]  ;;  %v435_v9 = vld [vmem:[%s2402_s16 + $0x128] sm:$0xff]  ;;  %v437_v10 = vld [vmem:[%s2402_s16 + $0x138] sm:$0xff] }
  0x3c   : > { %1990 = vmatpush3.bf16.msra.mxu1 %v1989_v38  ;;  %v434_v11 = vld [vmem:[%s2402_s16 + $0x120] sm:$0xff]  ;;  %v436_v12 = vld [vmem:[%s2402_s16 + $0x130] sm:$0xff]  ;;  %v439_v13 = vld [vmem:[%s2402_s16 + $0x148] sm:$0xff] }
  0x3d   : > { %598 = vmatmul.mubr.f32.vlgmr.msra.gmra.mrb[0].mxu0 %v398_v39  ;;  %v441_v14 = vld [vmem:[%s2402_s16 + $0x158] sm:$0xff]  ;;  %v438_v15 = vld [vmem:[%s2402_s16 + $0x140] sm:$0xff]  ;;  %v440_v16 = vld [vmem:[%s2402_s16 + $0x150] sm:$0xff] }
  0x3e   : > { %602 = vmatprep.mubr.f32.mxu0 %v403_v41  ;;  %v443_v17 = vld [vmem:[%s2402_s16 + $0x168] sm:$0xff]  ;;  %v445_v18 = vld [vmem:[%s2402_s16 + $0x178] sm:$0xff]  ;;  %v442_v19 = vld [vmem:[%s2402_s16 + $0x160] sm:$0xff] }
  0x3f   : > { %743 = vmatmul.mubr.f32.vlgmr.msra.gmra.mrb[0].mxu1 %v400_v40  ;;  %v444_v20 = vld [vmem:[%s2402_s16 + $0x170] sm:$0xff]  ;;  %v447_v21 = vld [vmem:[%s2402_s16 + $0x188] sm:$0xff]  ;;  %v449_v22 = vld [vmem:[%s2402_s16 + $0x198] sm:$0xff] }
  0x40   : > { %747 = vmatprep.mubr.f32.mxu1 %v405_v42  ;;  %v446_v23 = vld [vmem:[%s2402_s16 + $0x180] sm:$0xff]  ;;  %v448_v24 = vld [vmem:[%s2402_s16 + $0x190] sm:$0xff]  ;;  %v451_v25 = vld [vmem:[%s2402_s16 + $0x1a8] sm:$0xff] }
  0x41   : > { %603 = vmatmul.mubr.f32.gmra.mrb[2].mxu0 %v402_v43  ;;  %v453_v26 = vld [vmem:[%s2402_s16 + $0x1b8] sm:$0xff]  ;;  %v450_v27 = vld [vmem:[%s2402_s16 + $0x1a0] sm:$0xff]  ;;  %v452_v28 = vld [vmem:[%s2402_s16 + $0x1b0] sm:$0xff] }
  0x42   : > { %607 = vmatprep.mubr.f32.mxu0 %v407_v45  ;;  %v455_v29 = vld [vmem:[%s2402_s16 + $0x1c8] sm:$0xff]  ;;  %v457_v30 = vld [vmem:[%s2402_s16 + $0x1d8] sm:$0xff]  ;;  %v454_v31 = vld [vmem:[%s2402_s16 + $0x1c0] sm:$0xff] }
  0x43   : > { %748 = vmatmul.mubr.f32.gmra.mrb[2].mxu1 %v404_v44  ;;  %v456_v32 = vld [vmem:[%s2402_s16 + $0x1d0] sm:$0xff]  ;;  %v459_v33 = vld [vmem:[%s2402_s16 + $0x1e8] sm:$0xff]  ;;  %v461_v34 = vld [vmem:[%s2402_s16 + $0x1f8] sm:$0xff] }
  0x44   : > { %752 = vmatprep.mubr.f32.mxu1 %v409_v46  ;;  %v458_v35 = vld [vmem:[%s2402_s16 + $0x1e0] sm:$0xff]  ;;  %v460_v36 = vld [vmem:[%s2402_s16 + $0x1f0] sm:$0xff] }
  0x45   : > { %608 = vmatmul.mubr.f32.gmra.mrb[4].mxu0 %v406_v47  ;;  %v2664_v38 = vld [vmem:[%s3257_s3] ss:$0 sm:$0xff] }
  0x46   : > { %612 = vmatprep.mubr.f32.mxu0 %v411_v49 }
  0x47   : > { %753 = vmatmul.mubr.f32.gmra.mrb[4].mxu1 %v408_v48 }
  0x48   : > { %757 = vmatprep.mubr.f32.mxu1 %v413_v50 }
  0x49   : > { %613 = vmatmul.mubr.f32.gmra.mrb[6].mxu0 %v410_v51 }
  0x4a   : > { %617 = vmatprep.mubr.f32.mxu0 %v415_v53 }
  0x4b   : > { %758 = vmatmul.mubr.f32.gmra.mrb[6].mxu1 %v412_v52 }
  0x4c   : > { %762 = vmatprep.mubr.f32.mxu1 %v417_v54 }
  0x4d   : > { %618 = vmatmul.mubr.f32.gmra.mrb[8].mxu0 %v414_v55 }
  0x4e   : > { %622 = vmatprep.mubr.f32.mxu0 %v419_v57 }
  0x4f   : > { %763 = vmatmul.mubr.f32.gmra.mrb[8].mxu1 %v416_v56 }
  0x50   : > { %767 = vmatprep.mubr.f32.mxu1 %v421_v58 }
  0x51   : > { %623 = vmatmul.mubr.f32.gmra.mrb[10].mxu0 %v418_v59 }
  0x52   : > { %627 = vmatprep.mubr.f32.mxu0 %v423_v61 }
  0x53   : > { %768 = vmatmul.mubr.f32.gmra.mrb[10].mxu1 %v420_v60 }
  0x54   : > { %772 = vmatprep.mubr.f32.mxu1 %v425_v62 }
  0x55   : > { %628 = vmatmul.mubr.f32.gmra.mrb[12].mxu0 %v422_v63 }
  0x56   : > { %632 = vmatprep.mubr.f32.mxu0 %v427_v1 }
  0x57   : > { %773 = vmatmul.mubr.f32.gmra.mrb[12].mxu1 %v424_v0 }
  0x58   : > { %777 = vmatprep.mubr.f32.mxu1 %v429_v2 }
  0x59   : > { %633 = vmatmul.mubr.f32.gmra.mrb[14].mxu0 %v426_v3 }
  0x5a   : > { %637 = vmatprep.mubr.f32.mxu0 %v431_v5 }
  0x5b   : > { %778 = vmatmul.mubr.f32.gmra.mrb[14].mxu1 %v428_v4 }
  0x5c   : > { %782 = vmatprep.mubr.f32.mxu1 %v433_v6  ;;  %v2673_v6 = vld [vmem:[%s3258_s4] ss:$0 sm:$0xff] }
  0x5d   : > { %638 = vmatmul.mubr.f32.gmra.mrb[16].mxu0 %v430_v7 }
  0x5e   : > { %642 = vmatprep.mubr.f32.mxu0 %v435_v9 }
  0x5f   : > { %783 = vmatmul.mubr.f32.gmra.mrb[16].mxu1 %v432_v8 }
  0x60   : > { %787 = vmatprep.mubr.f32.mxu1 %v437_v10 }
  0x61   : > { %643 = vmatmul.mubr.f32.gmra.mrb[18].mxu0 %v434_v11 }
  0x62   : > { %647 = vmatprep.mubr.f32.mxu0 %v439_v13 }
  0x63   : > { %788 = vmatmul.mubr.f32.gmra.mrb[18].mxu1 %v436_v12 }
  0x64   : > { %792 = vmatprep.mubr.f32.mxu1 %v441_v14 }
  0x65   : > { %648 = vmatmul.mubr.f32.gmra.mrb[20].mxu0 %v438_v15 }
  0x66   : > { %652 = vmatprep.mubr.f32.mxu0 %v443_v17 }
  0x67   : > { %793 = vmatmul.mubr.f32.gmra.mrb[20].mxu1 %v440_v16 }
  0x68   : > { %797 = vmatprep.mubr.f32.mxu1 %v445_v18 }
  0x69   : > { %653 = vmatmul.mubr.f32.gmra.mrb[22].mxu0 %v442_v19 }
  0x6a   : > { %657 = vmatprep.mubr.f32.mxu0 %v447_v21 }
  0x6b   : > { %798 = vmatmul.mubr.f32.gmra.mrb[22].mxu1 %v444_v20 }
  0x6c   : > { %802 = vmatprep.mubr.f32.mxu1 %v449_v22 }
  0x6d   : > { %658 = vmatmul.mubr.f32.gmra.mrb[24].mxu0 %v446_v23 }
  0x6e   : > { %662 = vmatprep.mubr.f32.mxu0 %v451_v25 }
  0x6f   : > { %803 = vmatmul.mubr.f32.gmra.mrb[24].mxu1 %v448_v24 }
  0x70   : > { %807 = vmatprep.mubr.f32.mxu1 %v453_v26 }
  0x71   : > { %663 = vmatmul.mubr.f32.gmra.mrb[26].mxu0 %v450_v27 }
  0x72   : > { %667 = vmatprep.mubr.f32.mxu0 %v455_v29 }
  0x73   : > { %808 = vmatmul.mubr.f32.gmra.mrb[26].mxu1 %v452_v28 }
  0x74   : > { %812 = vmatprep.mubr.f32.mxu1 %v457_v30 }
  0x75   : > { %668 = vmatmul.mubr.f32.gmra.mrb[28].mxu0 %v454_v31 }
  0x76   : > { %672 = vmatprep.mubr.f32.mxu0 %v459_v33 }
  0x77   : > { %813 = vmatmul.mubr.f32.gmra.mrb[28].mxu1 %v456_v32 }
  0x78   : > { %817 = vmatprep.mubr.f32.mxu1 %v461_v34 }
  0x79   : > { %673 = vmatmul.mubr.f32.gmra.mrb[30].mxu0 %v458_v35 }
  0x7b   : > { %818 = vmatmul.mubr.f32.gmra.mrb[30].mxu1 %v460_v36 }
 0x110   : > { %v1799_v37 = vpop.f32.mrb[0].mxu0 }
 0x111   : > { %v1800_v39 = vpop.f32.mrb[1].mxu0 }
 0x112   : > { %v1879_v40 = vpop.f32.mrb[0].mxu1  ;;  %v1801_v41 = vadd.f32 %v1800_v39, %v1799_v37 }
 0x113   : > { %v1880_v42 = vpop.f32.mrb[1].mxu1 }
 0x114   : > { %v1881_v43 = vadd.f32 %v1880_v42, %v1879_v40  ;;  %v600_v44 = vadd.f32 %v1801_v41, %v2664_v38  ;;  %v1802_v45 = vpop.f32.mrb[2].mxu0 }
 0x115   : > { %v1803_v46 = vpop.f32.mrb[3].mxu0 }
 0x116   : > { %v1882_v47 = vpop.f32.mrb[2].mxu1  ;;  %v745_v48 = vadd.f32 %v1881_v43, %v600_v44  ;;  %v1804_v49 = vadd.f32 %v1803_v46, %v1802_v45 }
 0x117   : > { %v1883_v50 = vpop.f32.mrb[3].mxu1 }
 0x118   : > { %v1884_v51 = vadd.f32 %v1883_v50, %v1882_v47  ;;  %2035 = vtanh.f32 %v745_v48  ;;  %v605_v52 = vadd.f32 %v1804_v49, %v2664_v38  ;;  %v1805_v53 = vpop.f32.mrb[4].mxu0 }
 0x119   : > { %v1806_v54 = vpop.f32.mrb[5].mxu0 }
 0x11a   : > { %v1885_v55 = vpop.f32.mrb[4].mxu1  ;;  %v750_v56 = vadd.f32 %v1884_v51, %v605_v52  ;;  %v1807_v57 = vadd.f32 %v1806_v54, %v1805_v53 }
 0x11b   : > { %v1886_v58 = vpop.f32.mrb[5].mxu1 }
 0x11c   : > { %v1887_v59 = vadd.f32 %v1886_v58, %v1885_v55  ;;  %2037 = vtanh.f32 %v750_v56  ;;  %v610_v60 = vadd.f32 %v1807_v57, %v2664_v38  ;;  %v1808_v61 = vpop.f32.mrb[6].mxu0  ;;  %v2298_v58 = vmov 0  }
 0x11d   : > { %v1809_v62 = vpop.f32.mrb[7].mxu0  ;;  %2033 = vset.pattern.permute.xlu1 %v2298_v58  ;;  %2034 = vset.pattern.permute.xlu0 %v2298_v58 }
 0x11e   : > { %v1888_v63 = vpop.f32.mrb[6].mxu1  ;;  %v755_v0 = vadd.f32 %v1887_v59, %v610_v60  ;;  %v1810_v1 = vadd.f32 %v1809_v62, %v1808_v61 }
 0x11f   : > { %v1889_v2 = vpop.f32.mrb[7].mxu1 }
 0x120   : > { %v1890_v3 = vadd.f32 %v1889_v2, %v1888_v63  ;;  %2039 = vtanh.f32 %v755_v0  ;;  %v615_v4 = vadd.f32 %v1810_v1, %v2664_v38  ;;  %v1811_v5 = vpop.f32.mrb[8].mxu0 }
 0x121   : > { %v1812_v7 = vpop.f32.mrb[9].mxu0 }
 0x122   : > { %v1891_v8 = vpop.f32.mrb[8].mxu1  ;;  %v2036_v9 = vpop.eup %2035  ;;  %v760_v10 = vadd.f32 %v1890_v3, %v615_v4  ;;  %v1813_v11 = vadd.f32 %v1812_v7, %v1811_v5 }
 0x123   : > { %v1892_v12 = vpop.f32.mrb[9].mxu1  ;;  %v846_v14 = vmul.f32 %v2036_v9, %v2673_v6 }
 0x124   : > { %v1893_v13 = vadd.f32 %v1892_v12, %v1891_v8  ;;  %2041 = vtanh.f32 %v760_v10  ;;  %v620_v15 = vadd.f32 %v1813_v11, %v2664_v38  ;;  %v1814_v16 = vpop.f32.mrb[10].mxu0 }
 0x125   : > { %v1815_v17 = vpop.f32.mrb[11].mxu0  ;;  %862 = vadd.xlane.f32.xlu0 %v846_v14 }
 0x126   : > { %v1894_v18 = vpop.f32.mrb[10].mxu1  ;;  %v2038_v19 = vpop.eup %2037  ;;  %v765_v20 = vadd.f32 %v1893_v13, %v620_v15  ;;  %v1816_v21 = vadd.f32 %v1815_v17, %v1814_v16 }
 0x127   : > { %v1895_v22 = vpop.f32.mrb[11].mxu1  ;;  %v847_v24 = vmul.f32 %v2038_v19, %v2673_v6 }
 0x128   : > { %v1896_v23 = vadd.f32 %v1895_v22, %v1894_v18  ;;  %2043 = vtanh.f32 %v765_v20  ;;  %v625_v25 = vadd.f32 %v1816_v21, %v2664_v38  ;;  %v1817_v26 = vpop.f32.mrb[12].mxu0 }
 0x129   : > { %v1818_v27 = vpop.f32.mrb[13].mxu0  ;;  %864 = vadd.xlane.f32.xlu0 %v847_v24 }
 0x12a   : > { %v1897_v28 = vpop.f32.mrb[12].mxu1  ;;  %v2040_v29 = vpop.eup %2039  ;;  %v770_v30 = vadd.f32 %v1896_v23, %v625_v25  ;;  %v1819_v31 = vadd.f32 %v1818_v27, %v1817_v26 }
 0x12b   : > { %v1898_v32 = vpop.f32.mrb[13].mxu1  ;;  %v848_v34 = vmul.f32 %v2040_v29, %v2673_v6 }
 0x12c   : > { %v1899_v33 = vadd.f32 %v1898_v32, %v1897_v28  ;;  %2045 = vtanh.f32 %v770_v30  ;;  %v630_v35 = vadd.f32 %v1819_v31, %v2664_v38  ;;  %v1820_v36 = vpop.f32.mrb[14].mxu0 }
 0x12d   : > { %v1821_v37 = vpop.f32.mrb[15].mxu0  ;;  %866 = vadd.xlane.f32.xlu1 %v848_v34 }
 0x12e   : > { %v1900_v39 = vpop.f32.mrb[14].mxu1  ;;  %v2042_v40 = vpop.eup %2041  ;;  %v775_v41 = vadd.f32 %v1899_v33, %v630_v35  ;;  %v1822_v42 = vadd.f32 %v1821_v37, %v1820_v36 }
 0x12f   : > { %v1901_v43 = vpop.f32.mrb[15].mxu1  ;;  %v849_v45 = vmul.f32 %v2042_v40, %v2673_v6 }
 0x130   : > { %v1902_v44 = vadd.f32 %v1901_v43, %v1900_v39  ;;  %2047 = vtanh.f32 %v775_v41  ;;  %v635_v46 = vadd.f32 %v1822_v42, %v2664_v38  ;;  %v1823_v47 = vpop.f32.mrb[16].mxu0 }
 0x131   : > { %v1824_v48 = vpop.f32.mrb[17].mxu0  ;;  %868 = vadd.xlane.f32.xlu1 %v849_v45 }
 0x132   : > { %v1903_v49 = vpop.f32.mrb[16].mxu1  ;;  %v2044_v50 = vpop.eup %2043  ;;  %v780_v51 = vadd.f32 %v1902_v44, %v635_v46  ;;  %v1825_v52 = vadd.f32 %v1824_v48, %v1823_v47 }
 0x133   : > { %v1904_v53 = vpop.f32.mrb[17].mxu1  ;;  %v850_v55 = vmul.f32 %v2044_v50, %v2673_v6 }
 0x134   : > { %v1905_v54 = vadd.f32 %v1904_v53, %v1903_v49  ;;  %2049 = vtanh.f32 %v780_v51  ;;  %v640_v56 = vadd.f32 %v1825_v52, %v2664_v38  ;;  %v1826_v57 = vpop.f32.mrb[18].mxu0 }
 0x135   : > { %v1827_v59 = vpop.f32.mrb[19].mxu0  ;;  %870 = vadd.xlane.f32.xlu0 %v850_v55 }
 0x136   : > { %v1906_v60 = vpop.f32.mrb[18].mxu1  ;;  %v2046_v61 = vpop.eup %2045  ;;  %v785_v62 = vadd.f32 %v1905_v54, %v640_v56  ;;  %v1828_v63 = vadd.f32 %v1827_v59, %v1826_v57 }
 0x137   : > { %v1907_v0 = vpop.f32.mrb[19].mxu1  ;;  %v851_v2 = vmul.f32 %v2046_v61, %v2673_v6 }
 0x138   : > { %v1908_v1 = vadd.f32 %v1907_v0, %v1906_v60  ;;  %2051 = vtanh.f32 %v785_v62  ;;  %v645_v3 = vadd.f32 %v1828_v63, %v2664_v38  ;;  %v1829_v4 = vpop.f32.mrb[20].mxu0 }
 0x139   : > { %v1830_v5 = vpop.f32.mrb[21].mxu0  ;;  %872 = vadd.xlane.f32.xlu1 %v851_v2 }
 0x13a   : > { %v1909_v7 = vpop.f32.mrb[20].mxu1  ;;  %v2048_v8 = vpop.eup %2047  ;;  %v790_v9 = vadd.f32 %v1908_v1, %v645_v3  ;;  %v1831_v10 = vadd.f32 %v1830_v5, %v1829_v4 }
 0x13b   : > { %v1910_v11 = vpop.f32.mrb[21].mxu1  ;;  %v852_v13 = vmul.f32 %v2048_v8, %v2673_v6 }
 0x13c   : > { %v1911_v12 = vadd.f32 %v1910_v11, %v1909_v7  ;;  %2053 = vtanh.f32 %v790_v9  ;;  %v650_v14 = vadd.f32 %v1831_v10, %v2664_v38  ;;  %v1832_v15 = vpop.f32.mrb[22].mxu0 }
 0x13d   : > { %v1833_v16 = vpop.f32.mrb[23].mxu0  ;;  %874 = vadd.xlane.f32.xlu0 %v852_v13  ;;  %v2707_v13 = vstv %s1752_s22 }
 0x13e   : > { %v1912_v17 = vpop.f32.mrb[22].mxu1  ;;  %v2050_v18 = vpop.eup %2049  ;;  %v795_v19 = vadd.f32 %v1911_v12, %v650_v14  ;;  %v1834_v20 = vadd.f32 %v1833_v16, %v1832_v15  ;;  %v2714_v16 = vstv %s952_s21 }
 0x13f   : > { %v1913_v21 = vpop.f32.mrb[23].mxu1  ;;  %v853_v23 = vmul.f32 %v2050_v18, %v2673_v6 }
 0x140   : > { %v1914_v22 = vadd.f32 %v1913_v21, %v1912_v17  ;;  %2055 = vtanh.f32 %v795_v19  ;;  %v655_v24 = vadd.f32 %v1834_v20, %v2664_v38  ;;  %v1835_v25 = vpop.f32.mrb[24].mxu0  ;;  %v2716_v17 = vld [vmem:[#allocation7] ss:$0 sm:$0xff] }
 0x141   : > { %v1836_v26 = vpop.f32.mrb[25].mxu0  ;;  %876 = vadd.xlane.f32.xlu1 %v853_v23 }
 0x142   : > { %v1915_v27 = vpop.f32.mrb[24].mxu1  ;;  %v2052_v28 = vpop.eup %2051  ;;  %v800_v29 = vadd.f32 %v1914_v22, %v655_v24  ;;  %v1837_v30 = vadd.f32 %v1836_v26, %v1835_v25 }
 0x143   : > { %v1916_v31 = vpop.f32.mrb[25].mxu1  ;;  %v854_v33 = vmul.f32 %v2052_v28, %v2673_v6 }
 0x144   : > { %v1917_v32 = vadd.f32 %v1916_v31, %v1915_v27  ;;  %2057 = vtanh.f32 %v800_v29  ;;  %v660_v34 = vadd.f32 %v1837_v30, %v2664_v38  ;;  %v1838_v35 = vpop.f32.mrb[26].mxu0 }
 0x145   : > { %v1839_v36 = vpop.f32.mrb[27].mxu0  ;;  %878 = vadd.xlane.f32.xlu0 %v854_v33 }
 0x146   : > { %v1918_v37 = vpop.f32.mrb[26].mxu1  ;;  %v2054_v39 = vpop.eup %2053  ;;  %v805_v40 = vadd.f32 %v1917_v32, %v660_v34  ;;  %v1840_v41 = vadd.f32 %v1839_v36, %v1838_v35 }
 0x147   : > { %v1919_v42 = vpop.f32.mrb[27].mxu1  ;;  %v855_v44 = vmul.f32 %v2054_v39, %v2673_v6 }
 0x148   : > { %v1920_v43 = vadd.f32 %v1919_v42, %v1918_v37  ;;  %2059 = vtanh.f32 %v805_v40  ;;  %v665_v45 = vadd.f32 %v1840_v41, %v2664_v38  ;;  %v1841_v46 = vpop.f32.mrb[28].mxu0 }
 0x149   : > { %v1842_v47 = vpop.f32.mrb[29].mxu0  ;;  %880 = vadd.xlane.f32.xlu1 %v855_v44 }
 0x14a   : > { %v1921_v48 = vpop.f32.mrb[28].mxu1  ;;  %v2056_v49 = vpop.eup %2055  ;;  %v810_v50 = vadd.f32 %v1920_v43, %v665_v45  ;;  %v1843_v51 = vadd.f32 %v1842_v47, %v1841_v46 }
 0x14b   : > { %v1922_v52 = vpop.f32.mrb[29].mxu1  ;;  %v856_v54 = vmul.f32 %v2056_v49, %v2673_v6 }
 0x14c   : > { %v1923_v53 = vadd.f32 %v1922_v52, %v1921_v48  ;;  %2061 = vtanh.f32 %v810_v50  ;;  %v670_v55 = vadd.f32 %v1843_v51, %v2664_v38  ;;  %v1844_v56 = vpop.f32.mrb[30].mxu0 }
 0x14d   : > { %v1845_v57 = vpop.f32.mrb[31].mxu0  ;;  %882 = vadd.xlane.f32.xlu0 %v856_v54 }
 0x14e   : > { %v1924_v58 = vpop.f32.mrb[30].mxu1  ;;  %v2058_v59 = vpop.eup %2057  ;;  %v815_v60 = vadd.f32 %v1923_v53, %v670_v55  ;;  %v1846_v61 = vadd.f32 %v1845_v57, %v1844_v56 }
 0x14f   : > { %v1925_v62 = vpop.f32.mrb[31].mxu1  ;;  %v857_v0 = vmul.f32 %v2058_v59, %v2673_v6 }
 0x150   : > { %v1926_v63 = vadd.f32 %v1925_v62, %v1924_v58  ;;  %2063 = vtanh.f32 %v815_v60  ;;  %v675_v1 = vadd.f32 %v1846_v61, %v2664_v38  ;;  %v918_v38 = vlaneseq }
 0x151   : > { %884 = vadd.xlane.f32.xlu1 %v857_v0 }
 0x152   : > { %v2060_v2 = vpop.eup %2059  ;;  %v820_v3 = vadd.f32 %v1926_v63, %v675_v1  ;;  %v2705_v12 = vshrl.u32 %v918_v38, 7 }
 0x153   : > { %v858_v4 = vmul.f32 %v2060_v2, %v2673_v6 }
 0x154   : > { %2065 = vtanh.f32 %v820_v3  ;;  %v936_v14 = vadd.s32 %v2707_v13, %v2705_v12  ;;  %v2712_v15 = vadd.s32 8, %v2705_v12  ;;  %v2722_v19 = vadd.s32 16, %v2705_v12 }
 0x155   : > { %886 = vadd.xlane.f32.xlu0 %v858_v4  ;;  %v2732_v24 = vadd.s32 24, %v2705_v12  ;;  %v2742_v29 = vadd.s32 32, %v2705_v12  ;;  %v2752_v34 = vadd.s32 40, %v2705_v12  ;;  %v2762_v40 = vadd.s32 48, %v2705_v12 }
 0x156   : > { %v2062_v5 = vpop.eup %2061  ;;  %vm954_vm2 = vcmp.lt.s32.totalorder %v936_v14, %v2714_v16  ;;  %v937_v18 = vadd.s32 %v2707_v13, %v2712_v15  ;;  %v938_v23 = vadd.s32 %v2707_v13, %v2722_v19  ;;  %v2772_v45 = vadd.s32 56, %v2705_v12 }
 0x157   : > { %v859_v7 = vmul.f32 %v2062_v5, %v2673_v6  ;;  %v939_v28 = vadd.s32 %v2707_v13, %v2732_v24  ;;  %v940_v33 = vadd.s32 %v2707_v13, %v2742_v29  ;;  %v941_v39 = vadd.s32 %v2707_v13, %v2752_v34 }
 0x158   : > { %vm955_vm3 = vcmp.lt.s32.totalorder %v937_v18, %v2714_v16  ;;  %vm956_vm4 = vcmp.lt.s32.totalorder %v938_v23, %v2714_v16  ;;  %v942_v44 = vadd.s32 %v2707_v13, %v2762_v40  ;;  %v943_v49 = vadd.s32 %v2707_v13, %v2772_v45 }
 0x159   : > { %888 = vadd.xlane.f32.xlu1 %v859_v7  ;;  %vm957_vm5 = vcmp.lt.s32.totalorder %v939_v28, %v2714_v16  ;;  %vm958_vm6 = vcmp.lt.s32.totalorder %v940_v33, %v2714_v16  ;;  %vm959_vm7 = vcmp.lt.s32.totalorder %v941_v39, %v2714_v16  ;;  %v2782_v50 = vadd.s32 64, %v2705_v12 }
 0x15a   : > { %v2064_v8 = vpop.eup %2063  ;;  %vm960_vm8 = vcmp.lt.s32.totalorder %v942_v44, %v2714_v16  ;;  %vm961_vm9 = vcmp.lt.s32.totalorder %v943_v49, %v2714_v16  ;;  %v2792_v55 = vadd.s32 72, %v2705_v12  ;;  %v2802_v60 = vadd.s32 80, %v2705_v12 }
 0x15b   : > { %v860_v9 = vmul.f32 %v2064_v8, %v2673_v6  ;;  %v944_v54 = vadd.s32 %v2707_v13, %v2782_v50  ;;  %v2821_v7 = vadd.s32 88, %v2705_v12  ;;  %v2824_v8 = vadd.s32 104, %v2705_v12 }
 0x15c   : > { %v945_v59 = vadd.s32 %v2707_v13, %v2792_v55  ;;  %v946_v0 = vadd.s32 %v2707_v13, %v2802_v60 }
 0x15d   : > { %890 = vadd.xlane.f32.xlu0 %v860_v9  ;;  %vm962_vm10 = vcmp.lt.s32.totalorder %v944_v54, %v2714_v16  ;;  %v2827_v9 = vadd.s32 96, %v2705_v12  ;;  %v949_v18 = vadd.s32 %v2707_v13, %v2824_v8 }
 0x15e   : > { %v2066_v10 = vpop.eup %2065  ;;  %vm963_vm11 = vcmp.lt.s32.totalorder %v945_v59, %v2714_v16  ;;  %vm964_vm12 = vcmp.lt.s32.totalorder %v946_v0, %v2714_v16 }
 0x15f   : > { %v861_v11 = vmul.f32 %v2066_v10, %v2673_v6  ;;  %v2830_v10 = vadd.s32 112, %v2705_v12  ;;  %vm967_vm15 = vcmp.lt.s32.totalorder %v949_v18, %v2714_v16 }
 0x161   : > { %892 = vadd.xlane.f32.xlu1 %v861_v11  ;;  %v2833_v11 = vadd.s32 120, %v2705_v12 }
 0x163   : > { %v951_v23 = vadd.s32 %v2707_v13, %v2833_v11 }
 0x1b2   : > { %v863_v6 = vpop.xlane.xlu0 %862 }
 0x1b3   : > { %v901_v20 = vadd.f32 %v2716_v17, %v863_v6  ;;  %v947_v6 = vadd.s32 %v2707_v13, %v2821_v7 }
 0x1b5   : > { %v2725_v21 = vsel %vm954_vm2, %v901_v20, -1e+30  ;;  %v948_v20 = vadd.s32 %v2707_v13, %v2827_v9  ;;  %vm965_vm14 = vcmp.lt.s32.totalorder %v947_v6, %v2714_v16  ;;  %vm969_vm2 = vcmp.lt.s32.totalorder %v951_v23, %v2714_v16 }
 0x1b6   : > { %1420 = vperm.xlu1 %2033, %v2725_v21   ;;  %v865_v22 = vpop.xlane.xlu0 %864 }
 0x1b7   : > { %v902_v25 = vadd.f32 %v2716_v17, %v865_v22  ;;  %v950_v22 = vadd.s32 %v2707_v13, %v2830_v10  ;;  %vm966_vm0 = vcmp.lt.s32.totalorder %v948_v20, %v2714_v16  ;;  %v988_v13 = vsel %vm987_vm13, %v2725_v21, -inf }
 0x1b9   : > { %v2735_v26 = vsel %vm955_vm3, %v902_v25, -1e+30  ;;  %vm968_vm1 = vcmp.lt.s32.totalorder %v950_v22, %v2714_v16  ;;  %vm1123_vm3 = vcmask 0  }
 0x1ba   : > { %v867_v27 = vpop.xlane.xlu1 %866  ;;  %1425 = vperm.xlu0 %2034, %v2735_v26   ;;  %v989_v33 = vsel %vm987_vm13, %v2735_v26, -inf }
 0x1bb   : > { %v903_v30 = vadd.f32 %v2716_v17, %v867_v27 }
 0x1bd   : > { %v2745_v31 = vsel %vm956_vm4, %v903_v30, -1e+30 }
 0x1be   : > { %v869_v32 = vpop.xlane.xlu1 %868  ;;  %1430 = vperm.xlu0 %2034, %v2745_v31  }
 0x1bf   : > { %v904_v35 = vadd.f32 %v2716_v17, %v869_v32 }
 0x1c1   : > { %v2755_v36 = vsel %vm957_vm5, %v904_v35, -1e+30  ;;  %v990_v35 = vsel %vm987_vm13, %v2745_v31, -inf }
 0x1c2   : > { %1435 = vperm.xlu0 %2034, %v2755_v36   ;;  %v871_v37 = vpop.xlane.xlu0 %870 }
 0x1c3   : > { %v905_v41 = vadd.f32 %v2716_v17, %v871_v37 }
 0x1c5   : > { %v2765_v42 = vsel %vm958_vm6, %v905_v41, -1e+30 }
 0x1c6   : > { %v873_v43 = vpop.xlane.xlu1 %872  ;;  %1440 = vperm.xlu0 %2034, %v2765_v42   ;;  %v992_v41 = vsel %vm987_vm13, %v2765_v42, -inf }
 0x1c7   : > { %v906_v46 = vadd.f32 %v2716_v17, %v873_v43 }
 0x1c9   : > { %v2775_v47 = vsel %vm959_vm7, %v906_v46, -1e+30 }
 0x1ca   : > { %1445 = vperm.xlu0 %2034, %v2775_v47   ;;  %v875_v48 = vpop.xlane.xlu0 %874  ;;  %v994_v37 = vsel %vm987_vm13, %v2775_v47, -inf }
 0x1cb   : > { %v907_v51 = vadd.f32 %v2716_v17, %v875_v48  ;;  %v991_v48 = vsel %vm987_vm13, %v2755_v36, -inf  ;;  %v995_v54 = vmax.f32 %v989_v33, %v994_v37 }
 0x1cd   : > { %v2785_v52 = vsel %vm960_vm8, %v907_v51, -1e+30 }
 0x1ce   : > { %v877_v53 = vpop.xlane.xlu1 %876  ;;  %1450 = vperm.xlu0 %2034, %v2785_v52   ;;  %v996_v49 = vsel %vm987_vm13, %v2785_v52, -inf }
 0x1cf   : > { %v908_v56 = vadd.f32 %v2716_v17, %v877_v53 }
 0x1d1   : > { %v2795_v57 = vsel %vm961_vm9, %v908_v56, -1e+30 }
 0x1d2   : > { %1455 = vperm.xlu0 %2034, %v2795_v57   ;;  %v879_v58 = vpop.xlane.xlu0 %878  ;;  %v998_v51 = vsel %vm987_vm13, %v2795_v57, -inf }
 0x1d3   : > { %v909_v61 = vadd.f32 %v2716_v17, %v879_v58 }
 0x1d5   : > { %v2805_v62 = vsel %vm962_vm10, %v909_v61, -1e+30  ;;  %v993_v61 = vmax.f32 %v988_v13, %v992_v41 }
 0x1d6   : > { %v881_v63 = vpop.xlane.xlu1 %880  ;;  %1460 = vperm.xlu0 %2034, %v2805_v62   ;;  %v1000_v56 = vsel %vm987_vm13, %v2805_v62, -inf }
 0x1d7   : > { %v910_v1 = vadd.f32 %v2716_v17, %v881_v63  ;;  %v1001_v20 = vmax.f32 %v993_v61, %v1000_v56  ;;  %v2904_v56 = vsub.s32 0, %v2705_v12 }
 0x1d9   : > { %v2812_v2 = vsel %vm963_vm11, %v910_v1, -1e+30 }
 0x1da   : > { %1465 = vperm.xlu0 %2034, %v2812_v2   ;;  %v883_v3 = vpop.xlane.xlu0 %882  ;;  %v1002_v53 = vsel %vm987_vm13, %v2812_v2, -inf }
 0x1db   : > { %v911_v4 = vadd.f32 %v2716_v17, %v883_v3  ;;  %v1003_v6 = vmax.f32 %v995_v54, %v1002_v53  ;;  %v986_v54 = vld [vmem:[#allocation2] sm:$0x1] }
 0x1dd   : > { %v2817_v5 = vsel %vm964_vm12, %v911_v4, -1e+30  ;;  %v997_v4 = vmax.f32 %v990_v35, %v996_v49 }
 0x1de   : > { %1470 = vperm.xlu0 %2034, %v2817_v5   ;;  %v885_v14 = vpop.xlane.xlu1 %884  ;;  %v1004_v0 = vsel %vm987_vm13, %v2817_v5, -inf }
 0x1df   : > { %v912_v28 = vadd.f32 %v2716_v17, %v885_v14  ;;  %v999_v14 = vmax.f32 %v991_v48, %v998_v51 }
 0x1e1   : > { %v2863_v43 = vsel %vm965_vm14, %v912_v28, -1e+30  ;;  %v1005_v28 = vmax.f32 %v997_v4, %v1004_v0 }
 0x1e2   : > { %v887_v25 = vpop.xlane.xlu0 %886  ;;  %v1006_v63 = vsel %vm987_vm13, %v2863_v43, -inf }
 0x1e3   : > { %v913_v32 = vadd.f32 %v2716_v17, %v887_v25 }
 0x1e5   : > { %v2880_v58 = vsel %vm966_vm0, %v913_v32, -1e+30 }
 0x1e6   : > { %v889_v27 = vpop.xlane.xlu1 %888  ;;  %v1008_v22 = vsel %vm987_vm13, %v2880_v58, -inf }
 0x1e7   : > { %v914_v30 = vadd.f32 %v2716_v17, %v889_v27  ;;  %v1007_v27 = vmax.f32 %v999_v14, %v1006_v63  ;;  %v1009_v33 = vmax.f32 %v1001_v20, %v1008_v22 }
 0x1e9   : > { %v2865_v44 = vsel %vm967_vm15, %v914_v30, -1e+30 }
 0x1ea   : > { %v891_v39 = vpop.xlane.xlu0 %890  ;;  %v1010_v1 = vsel %vm987_vm13, %v2865_v44, -inf }
 0x1eb   : > { %v915_v46 = vadd.f32 %v2716_v17, %v891_v39  ;;  %v1011_v30 = vmax.f32 %v1003_v6, %v1010_v1 }
 0x1ed   : > { %v2884_v59 = vsel %vm968_vm1, %v915_v46, -1e+30  ;;  %v1016_v37 = vmax.f32 %v1009_v33, %v1011_v30 }
 0x1ee   : > { %v893_v3 = vpop.xlane.xlu1 %892  ;;  %v1012_v25 = vsel %vm987_vm13, %v2884_v59, -inf }
 0x1ef   : > { %v916_v18 = vadd.f32 %v2716_v17, %v893_v3  ;;  %v1013_v35 = vmax.f32 %v1005_v28, %v1012_v25 }
 0x1f1   : > { %v2899_v32 = vsel %vm969_vm2, %v916_v18, -1e+30 }
 0x1f2   : > { %v1014_v13 = vsel %vm987_vm13, %v2899_v32, -inf }
 0x1f3   : > { %v1015_v17 = vmax.f32 %v1007_v27, %v1014_v13 }
 0x1f5   : > { %v1017_v39 = vmax.f32 %v1013_v35, %v1015_v17 }
 0x1f7   : > { %v1018_v41 = vmax.f32 %v1016_v37, %v1017_v39 }
 0x1f9   : > { %v1019_v46 = vrot.slane %v1018_v41, 4 }
 0x1fb   : > { %v1020_v48 = vmax.f32 %v1018_v41, %v1019_v46 }
 0x1fd   : > { %v1021_v49 = vrot.slane %v1020_v48, 2 }
 0x1ff   : > { %v1022_v51 = vmax.f32 %v1020_v48, %v1021_v49 }
 0x201   : > { %v1023_v53 = vrot.slane %v1022_v51, 1 }
 0x203   : > { %v1024_v16 = vmax.f32 %v1022_v51, %v1023_v53 }
 0x205   : > { %v1025_v23 = vmax.f32 %v986_v54, %v1024_v16 }
 0x207   : > { %v1026_v61 = vsub.f32 %v986_v54, %v1025_v23  ;;  %v2907_v63 = vrot.slane %v1025_v23, %v2904_v56  ;;  %1399 = vst.msk [vmem:[#allocation2] sm:$0x1] %vm1123_vm3, %v1025_v23 }
 0x209   : > { %v1027_v0 = vmul.f32 1.442695, %v1026_v61  ;;  %v1035_v1 = vsub.f32 %v2725_v21, %v2907_v63  ;;  %v1036_v3 = vsub.f32 %v2735_v26, %v2907_v63  ;;  %v1037_v4 = vsub.f32 %v2745_v31, %v2907_v63 }
 0x20a   : > { %v1038_v14 = vsub.f32 %v2755_v36, %v2907_v63  ;;  %v1039_v6 = vsub.f32 %v2765_v42, %v2907_v63  ;;  %v1040_v22 = vsub.f32 %v2775_v47, %v2907_v63  ;;  %v1041_v26 = vsub.f32 %v2785_v52, %v2907_v63 }
 0x20b   : > { %2067 = vpow2.f32 %v1027_v0  ;;  %v1051_v18 = vmul.f32 1.442695, %v1035_v1  ;;  %v1053_v20 = vmul.f32 1.442695, %v1036_v3  ;;  %v1055_v25 = vmul.f32 1.442695, %v1037_v4 }
 0x20c   : > { %v1057_v21 = vmul.f32 1.442695, %v1038_v14  ;;  %v1059_v31 = vmul.f32 1.442695, %v1039_v6  ;;  %v1042_v36 = vsub.f32 %v2795_v57, %v2907_v63  ;;  %v1061_v27 = vmul.f32 1.442695, %v1040_v22 }
 0x20d   : > { %2069 = vpow2.f32 %v1051_v18  ;;  %v1043_v42 = vsub.f32 %v2805_v62, %v2907_v63  ;;  %v1063_v28 = vmul.f32 1.442695, %v1041_v26  ;;  %v1044_v30 = vsub.f32 %v2812_v2, %v2907_v63 }
 0x20e   : > { %2071 = vpow2.f32 %v1053_v20  ;;  %v1065_v52 = vmul.f32 1.442695, %v1042_v36  ;;  %v1045_v13 = vsub.f32 %v2817_v5, %v2907_v63  ;;  %v1046_v62 = vsub.f32 %v2863_v43, %v2907_v63 }
 0x20f   : > { %2073 = vpow2.f32 %v1055_v25  ;;  %v1067_v57 = vmul.f32 1.442695, %v1043_v42  ;;  %v1069_v17 = vmul.f32 1.442695, %v1044_v30  ;;  %v1047_v5 = vsub.f32 %v2880_v58, %v2907_v63 }
 0x210   : > { %2075 = vpow2.f32 %v1057_v21  ;;  %v1071_v46 = vmul.f32 1.442695, %v1045_v13  ;;  %v1048_v53 = vsub.f32 %v2865_v44, %v2907_v63  ;;  %v1073_v54 = vmul.f32 1.442695, %v1046_v62 }
 0x211   : > { %2077 = vpow2.f32 %v1059_v31  ;;  %v1075_v0 = vmul.f32 1.442695, %v1047_v5  ;;  %v1050_v14 = vsub.f32 %v2899_v32, %v2907_v63 }
 0x212   : > { %2079 = vpow2.f32 %v1061_v27  ;;  %v1077_v6 = vmul.f32 1.442695, %v1048_v53 }
 0x213   : > { %2081 = vpow2.f32 %v1063_v28  ;;  %v1081_v31 = vmul.f32 1.442695, %v1050_v14 }
 0x214   : > { %2083 = vpow2.f32 %v1065_v52 }
 0x215   : > { %v2928_v47 = vpop.eup %2067  ;;  %2085 = vpow2.f32 %v1067_v57 }
 0x216   : > { %1128 = vperm.xlu0 %2034, %v2928_v47   ;;  %2087 = vpow2.f32 %v1069_v17 }
 0x217   : > { %v2070_v33 = vpop.eup %2069  ;;  %2089 = vpow2.f32 %v1071_v46 }
 0x218   : > { %v2072_v35 = vpop.eup %2071  ;;  %v1085_v37 = vsel %vm987_vm13, %v2070_v33, 0.0  ;;  %1138 = vperm.xlu1 %2033, %v2070_v33   ;;  %2091 = vpow2.f32 %v1073_v54 }
 0x219   : > { %v2074_v2 = vpop.eup %2073  ;;  %v1086_v39 = vsel %vm987_vm13, %v2072_v35, 0.0  ;;  %2093 = vpow2.f32 %v1075_v0 }
 0x21a   : > { %1480 = vperm.xlu0 %2034, %v2880_v58   ;;  %v2076_v41 = vpop.eup %2075  ;;  %v1087_v48 = vadd.f32 %v1086_v39, %v1085_v37  ;;  %v1088_v49 = vsel %vm987_vm13, %v2074_v2, 0.0  ;;  %v1049_v58 = vsub.f32 %v2884_v59, %v2907_v63  ;;  %2095 = vpow2.f32 %v1077_v6 }
 0x21b   : > { %v2078_v51 = vpop.eup %2077  ;;  %v1090_v23 = vsel %vm987_vm13, %v2076_v41, 0.0 }
 0x21c   : > { %v1089_v16 = vadd.f32 %v1088_v49, %v1087_v48  ;;  %1143 = vperm.xlu1 %2033, %v2072_v35   ;;  %v2080_v61 = vpop.eup %2079  ;;  %v1092_v3 = vsel %vm987_vm13, %v2078_v51, 0.0  ;;  %v1079_v25 = vmul.f32 1.442695, %v1049_v58 }
 0x21d   : > { %v2082_v4 = vpop.eup %2081  ;;  %v1094_v20 = vsel %vm987_vm13, %v2080_v61, 0.0 }
 0x21e   : > { %1490 = vperm.xlu0 %2034, %v2884_v59   ;;  %v1091_v1 = vadd.f32 %v1090_v23, %v1089_v16  ;;  %v2084_v22 = vpop.eup %2083  ;;  %v1096_v59 = vsel %vm987_vm13, %v2082_v4, 0.0  ;;  %2097 = vpow2.f32 %v1079_v25 }
 0x21f   : > { %v2086_v26 = vpop.eup %2085  ;;  %v1098_v27 = vsel %vm987_vm13, %v2084_v22, 0.0  ;;  %2099 = vpow2.f32 %v1081_v31 }
 0x220   : > { %v1093_v18 = vadd.f32 %v1092_v3, %v1091_v1  ;;  %1148 = vperm.xlu1 %2033, %v2074_v2   ;;  %v2088_v63 = vpop.eup %2087  ;;  %v1100_v28 = vsel %vm987_vm13, %v2086_v26, 0.0  ;;  %v1083_v3 = vld [vmem:[#allocation3] sm:$0x1] }
 0x221   : > { %v2090_v30 = vpop.eup %2089  ;;  %v1102_v13 = vsel %vm987_vm13, %v2088_v63, 0.0 }
 0x222   : > { %v1095_v21 = vadd.f32 %v1094_v20, %v1093_v18  ;;  %v2092_v57 = vpop.eup %2091  ;;  %v1104_v35 = vsel %vm987_vm13, %v2090_v30, 0.0 }
 0x223   : > { %v2094_v62 = vpop.eup %2093  ;;  %v1106_v37 = vsel %vm987_vm13, %v2092_v57, 0.0 }
 0x224   : > { %v1097_v36 = vadd.f32 %v1096_v59, %v1095_v21  ;;  %1153 = vperm.xlu1 %2033, %v2076_v41   ;;  %v2096_v2 = vpop.eup %2095  ;;  %v1108_v41 = vsel %vm987_vm13, %v2094_v62, 0.0 }
 0x225   : > { %v1110_v48 = vsel %vm987_vm13, %v2096_v2, 0.0 }
 0x226   : > { %v1099_v42 = vadd.f32 %v1098_v27, %v1097_v36 }
 0x228   : > { %v1101_v52 = vadd.f32 %v1100_v28, %v1099_v42  ;;  %1158 = vperm.xlu1 %2033, %v2078_v51   ;;  %v2098_v5 = vpop.eup %2097  ;;  %v2102_v28 = vld [vmem:[%s2402_s16 + $0x28] sm:$0xff] }
 0x229   : > { %v2100_v49 = vpop.eup %2099  ;;  %v1112_v53 = vsel %vm987_vm13, %v2098_v5, 0.0 }
 0x22a   : > { %v1103_v33 = vadd.f32 %v1102_v13, %v1101_v52  ;;  %v1114_v16 = vsel %vm987_vm13, %v2100_v49, 0.0  ;;  %v2103_v52 = vld [vmem:[%s2402_s16 + $0x30] sm:$0xff] }
 0x22c   : > { %v1105_v17 = vadd.f32 %v1104_v35, %v1103_v33  ;;  %1163 = vperm.xlu1 %2033, %v2080_v61  }
 0x22e   : > { %v1107_v39 = vadd.f32 %v1106_v37, %v1105_v17  ;;  %v2105_v17 = vld [vmem:[%s2402_s16] sm:$0xff] }
 0x230   : > { %v1109_v46 = vadd.f32 %v1108_v41, %v1107_v39  ;;  %1168 = vperm.xlu1 %2033, %v2082_v4   ;;  %v1084_v4 = vmul.f32 %v2928_v47, %v1083_v3  ;;  %v2107_v41 = vld [vmem:[%s2402_s16 + $0x10] sm:$0xff] }
 0x232   : > { %v1111_v51 = vadd.f32 %v1110_v48, %v1109_v46  ;;  %v2108_v46 = vld [vmem:[%s2402_s16 + $0x18] sm:$0xff] }
 0x234   : > { %v1113_v54 = vadd.f32 %v1112_v53, %v1111_v51  ;;  %1173 = vperm.xlu1 %2033, %v2084_v22   ;;  %v2110_v53 = vld [vmem:[%s2402_s16 + $0x48] sm:$0xff] }
 0x235   : > { %v1421_v20 = vpop.permute.xlu1 %1420 }
 0x236   : > { %v1115_v23 = vadd.f32 %v1114_v16, %v1113_v54  ;;  %v2111_v16 = vld [vmem:[%s2402_s16 + $0x50] sm:$0xff] }
 0x238   : > { %v1116_v61 = vrot.slane %v1115_v23, 4  ;;  %1178 = vperm.xlu1 %2033, %v2086_v26  }
 0x239   : > { %v1426_v22 = vpop.permute.xlu0 %1425 }
 0x23a   : > { %v1117_v58 = vadd.f32 %v1116_v61, %v1115_v23  ;;  %v2112_v61 = vld [vmem:[%s2402_s16 + $0x58] sm:$0xff] }
 0x23c   : > { %v1118_v0 = vrot.slane %v1117_v58, 2  ;;  %1183 = vperm.xlu1 %2033, %v2088_v63   ;;  %v2101_v63 = vld [vmem:[%s2402_s16 + $0x20] sm:$0xff] }
 0x23d   : > { %v1431_v21 = vpop.permute.xlu0 %1430 }
 0x23e   : > { %v1119_v1 = vadd.f32 %v1118_v0, %v1117_v58 }
 0x240   : > { %v1120_v14 = vrot.slane %v1119_v1, 1  ;;  %1188 = vperm.xlu1 %2033, %v2090_v30  }
 0x241   : > { %v2968_v26 = vpop.permute.xlu0 %1435 }
 0x242   : > { %v1121_v6 = vadd.f32 %v1120_v14, %v1119_v1 }
 0x244   : > { %v1122_v18 = vadd.f32 %v1121_v6, %v1084_v4  ;;  %1193 = vperm.xlu1 %2033, %v2092_v57   ;;  %v2104_v57 = vld [vmem:[%s2402_s16 + $0x38] sm:$0xff] }
 0x246   : > { %1124 = vst.msk [vmem:[#allocation3] sm:$0x1] %vm1123_vm3, %v1122_v18  ;;  %v2113_v18 = vld [vmem:[%s2402_s16 + $0x60] sm:$0xff] }
 0x248   : > { %1198 = vperm.xlu1 %2033, %v2094_v62  }
 0x24c   : > { %1203 = vperm.xlu1 %2033, %v2096_v2   ;;  %v2106_v2 = vld [vmem:[%s2402_s16 + $0x8] sm:$0xff] }
 0x250   : > { %1208 = vperm.xlu1 %2033, %v2098_v5  }
 0x254   : > { %1213 = vperm.xlu1 %2033, %v2100_v49   ;;  %v2109_v49 = vld [vmem:[%s2402_s16 + $0x40] sm:$0xff] }
 0x258   : > { %1475 = vperm.xlu1 %2033, %v2863_v43   ;;  %v2972_v43 = vpop.permute.xlu0 %1440 }
 0x25c   : > { %1485 = vperm.xlu1 %2033, %v2865_v44   ;;  %v2975_v44 = vand.u32 127, %v918_v38  ;;  %v2983_v27 = vpop.permute.xlu0 %1445 }
 0x25e   : > { %vm1402_vm4 = vcmp.eq.s32.totalorder %v2705_v12, %v2975_v44  ;;  %vm1403_vm5 = vcmp.eq.s32.totalorder %v2712_v15, %v2975_v44  ;;  %vm1404_vm6 = vcmp.eq.s32.totalorder %v2722_v19, %v2975_v44  ;;  %vm1405_vm7 = vcmp.eq.s32.totalorder %v2732_v24, %v2975_v44 }
 0x25f   : > { %v1498_v62 = vsel %vm1402_vm4, %v1421_v20, 0.0  ;;  %v1499_v15 = vsel %vm1403_vm5, %v1426_v22, 0.0  ;;  %v2114_v22 = vld [vmem:[%s2402_s16 + $0x68] sm:$0xff]  ;;  %vm1406_vm8 = vcmp.eq.s32.totalorder %v2742_v29, %v2975_v44  ;;  %vm1407_vm9 = vcmp.eq.s32.totalorder %v2752_v34, %v2975_v44  ;;  %v2135_v29 = vld [vmem:[%s2402_s16 + $0x110] sm:$0xff] }
 0x260   : > { %1495 = vperm.xlu1 %2033, %v2899_v32   ;;  %v3003_v6 = vpop.permute.xlu0 %1450  ;;  %vm1408_vm10 = vcmp.eq.s32.totalorder %v2762_v40, %v2975_v44  ;;  %vm1409_vm11 = vcmp.eq.s32.totalorder %v2772_v45, %v2975_v44  ;;  %vm1410_vm12 = vcmp.eq.s32.totalorder %v2782_v50, %v2975_v44  ;;  %vm1411_vm13 = vcmp.eq.s32.totalorder %v2792_v55, %v2975_v44  ;;  %v2159_v45 = vld [vmem:[%s2402_s16 + $0x1d0] sm:$0xff] }
 0x261   : > { %vm1412_vm14 = vcmp.eq.s32.totalorder %v2802_v60, %v2975_v44  ;;  %vm1413_vm15 = vcmp.eq.s32.totalorder %v2821_v7, %v2975_v44  ;;  %vm1414_vm0 = vcmp.eq.s32.totalorder %v2827_v9, %v2975_v44  ;;  %vm1415_vm1 = vcmp.eq.s32.totalorder %v2824_v8, %v2975_v44 }
 0x262   : > { %vm1416_vm2 = vcmp.eq.s32.totalorder %v2830_v10, %v2975_v44  ;;  %vm1417_vm4 = vcmp.eq.s32.totalorder %v2833_v11, %v2975_v44  ;;  %vm1396_vm5 = vcmp.lt.s32.totalorder %v918_v38, 512 }
 0x297   : > { %v1139_v47 = vpop.permute.xlu1 %1138 }
 0x298   : > { %v1216_v37 = vmul.f32 %v2105_v17, %v1139_v47  ;;  %v1217_v39 = vmul.f32 %v2106_v2, %v1139_v47  ;;  %v1218_v5 = vmul.f32 %v2107_v41, %v1139_v47  ;;  %v1219_v48 = vmul.f32 %v2108_v46, %v1139_v47  ;;  %v2117_v17 = vld [vmem:[%s2402_s16 + $0x80] sm:$0xff]  ;;  %v2118_v2 = vld [vmem:[%s2402_s16 + $0x88] sm:$0xff] }
 0x29b   : > { %v1144_v25 = vpop.permute.xlu1 %1143 }
 0x29c   : > { %v1220_v42 = vmul.f32 %v2101_v63, %v1144_v25  ;;  %v1221_v30 = vmul.f32 %v2102_v28, %v1144_v25  ;;  %v1222_v13 = vmul.f32 %v2103_v52, %v1144_v25  ;;  %v1223_v33 = vmul.f32 %v2104_v57, %v1144_v25  ;;  %v2115_v25 = vld [vmem:[%s2402_s16 + $0x70] sm:$0xff]  ;;  %v2116_v28 = vld [vmem:[%s2402_s16 + $0x78] sm:$0xff] }
 0x29e   : > { %v1280_v0 = vadd.f32 %v1220_v42, %v1216_v37  ;;  %v1301_v1 = vadd.f32 %v1221_v30, %v1217_v39  ;;  %v1322_v3 = vadd.f32 %v1222_v13, %v1218_v5  ;;  %v1343_v14 = vadd.f32 %v1223_v33, %v1219_v48 }
 0x29f   : > { %v1149_v59 = vpop.permute.xlu1 %1148  ;;  %v1514_v42 = vadd.f32 %v1499_v15, %v1498_v62  ;;  %v1500_v30 = vsel %vm1404_vm6, %v1431_v21, 0.0  ;;  %v2119_v62 = vld [vmem:[%s2402_s16 + $0x90] sm:$0xff]  ;;  %v2120_v21 = vld [vmem:[%s2402_s16 + $0x98] sm:$0xff]  ;;  %vm1577_vm6 = vcmask (!%p1753_p6), 1040384  }
 0x2a0   : > { %v1224_v51 = vmul.f32 %v2109_v49, %v1149_v59  ;;  %v1225_v54 = vmul.f32 %v2110_v53, %v1149_v59  ;;  %v1226_v23 = vmul.f32 %v2111_v16, %v1149_v59  ;;  %v1227_v58 = vmul.f32 %v2112_v61, %v1149_v59  ;;  %v2121_v49 = vld [vmem:[%s2402_s16 + $0xa0] sm:$0xff]  ;;  %v2122_v53 = vld [vmem:[%s2402_s16 + $0xa8] sm:$0xff]  ;;  %v2123_v16 = vld [vmem:[%s2402_s16 + $0xb0] sm:$0xff] }
 0x2a1   : > { %v2124_v61 = vld [vmem:[%s2402_s16 + $0xb8] sm:$0xff] }
 0x2a2   : > { %v1281_v52 = vadd.f32 %v1280_v0, %v1224_v51  ;;  %v1302_v13 = vadd.f32 %v1301_v1, %v1225_v54  ;;  %v1323_v57 = vadd.f32 %v1322_v3, %v1226_v23  ;;  %v1344_v33 = vadd.f32 %v1343_v14, %v1227_v58  ;;  %v3036_v1 = vpop.permute.xlu0 %1455 }
 0x2a3   : > { %v1154_v31 = vpop.permute.xlu1 %1153  ;;  %v1515_v58 = vadd.f32 %v1514_v42, %v1500_v30  ;;  %v1501_v0 = vsel %vm1405_vm7, %v2968_v26, 0.0  ;;  %v2127_v26 = vld [vmem:[%s2402_s16 + $0xd0] sm:$0xff] }
 0x2a4   : > { %v1228_v20 = vmul.f32 %v2113_v18, %v1154_v31  ;;  %v1229_v47 = vmul.f32 %v2114_v22, %v1154_v31  ;;  %v1230_v63 = vmul.f32 %v2115_v25, %v1154_v31  ;;  %v1231_v59 = vmul.f32 %v2116_v28, %v1154_v31  ;;  %v2126_v25 = vld [vmem:[%s2402_s16 + $0xc8] sm:$0xff]  ;;  %v2128_v28 = vld [vmem:[%s2402_s16 + $0xd8] sm:$0xff] }
 0x2a6   : > { %v1282_v41 = vadd.f32 %v1281_v52, %v1228_v20  ;;  %v1303_v5 = vadd.f32 %v1302_v13, %v1229_v47  ;;  %v1324_v46 = vadd.f32 %v1323_v57, %v1230_v63  ;;  %v1345_v48 = vadd.f32 %v1344_v33, %v1231_v59  ;;  %v2129_v57 = vld [vmem:[%s2402_s16 + $0xe0] sm:$0xff] }
 0x2a7   : > { %v2970_v36 = vpop.permute.xlu1 %1158 }
 0x2a8   : > { %v1232_v37 = vmul.f32 %v2117_v17, %v2970_v36  ;;  %v1233_v31 = vmul.f32 %v2118_v2, %v2970_v36  ;;  %v1234_v19 = vmul.f32 %v2119_v62, %v2970_v36  ;;  %v1235_v15 = vmul.f32 %v2120_v21, %v2970_v36  ;;  %v2130_v17 = vld [vmem:[%s2402_s16 + $0xe8] sm:$0xff]  ;;  %v2131_v2 = vld [vmem:[%s2402_s16 + $0xf0] sm:$0xff]  ;;  %v2132_v62 = vld [vmem:[%s2402_s16 + $0xf8] sm:$0xff] }
 0x2a9   : > { %v1502_v21 = vsel %vm1406_vm8, %v2972_v43, 0.0 }
 0x2aa   : > { %v1283_v3 = vadd.f32 %v1282_v41, %v1232_v37  ;;  %v1304_v14 = vadd.f32 %v1303_v5, %v1233_v31  ;;  %v1325_v18 = vadd.f32 %v1324_v46, %v1234_v19  ;;  %v1346_v20 = vadd.f32 %v1345_v48, %v1235_v15  ;;  %v3060_v41 = vpop.permute.xlu0 %1460 }
 0x2ab   : > { %v2977_v32 = vpop.permute.xlu1 %1163 }
 0x2ac   : > { %v1236_v51 = vmul.f32 %v2121_v49, %v2977_v32  ;;  %v1237_v54 = vmul.f32 %v2122_v53, %v2977_v32  ;;  %v1238_v23 = vmul.f32 %v2123_v16, %v2977_v32  ;;  %v1239_v36 = vmul.f32 %v2124_v61, %v2977_v32  ;;  %v2125_v32 = vld [vmem:[%s2402_s16 + $0xc0] sm:$0xff]  ;;  %v2134_v53 = vld [vmem:[%s2402_s16 + $0x108] sm:$0xff]  ;;  %v2136_v16 = vld [vmem:[%s2402_s16 + $0x118] sm:$0xff] }
 0x2ae   : > { %v1284_v42 = vadd.f32 %v1283_v3, %v1236_v51  ;;  %v1305_v30 = vadd.f32 %v1304_v14, %v1237_v54  ;;  %v1326_v52 = vadd.f32 %v1325_v18, %v1238_v23  ;;  %v1347_v13 = vadd.f32 %v1346_v20, %v1239_v36  ;;  %v2137_v3 = vld [vmem:[%s2402_s16 + $0x120] sm:$0xff]  ;;  %v2138_v18 = vld [vmem:[%s2402_s16 + $0x128] sm:$0xff] }
 0x2af   : > { %v2989_v35 = vpop.permute.xlu1 %1168 }
 0x2b0   : > { %v1240_v47 = vmul.f32 %v2125_v32, %v2989_v35  ;;  %v1241_v24 = vmul.f32 %v2126_v25, %v2989_v35  ;;  %v1242_v63 = vmul.f32 %v2127_v26, %v2989_v35  ;;  %v1243_v59 = vmul.f32 %v2128_v28, %v2989_v35  ;;  %v2139_v32 = vld [vmem:[%s2402_s16 + $0x130] sm:$0xff]  ;;  %v2140_v25 = vld [vmem:[%s2402_s16 + $0x138] sm:$0xff] }
 0x2b1   : > { %v1516_v35 = vadd.f32 %v1515_v58, %v1501_v0 }
 0x2b2   : > { %v1285_v5 = vadd.f32 %v1284_v42, %v1240_v47  ;;  %v1306_v46 = vadd.f32 %v1305_v30, %v1241_v24  ;;  %v1327_v48 = vadd.f32 %v1326_v52, %v1242_v63  ;;  %v1348_v49 = vadd.f32 %v1347_v13, %v1243_v59  ;;  %v3076_v52 = vpop.permute.xlu0 %1465 }
 0x2b3   : > { %v3001_v4 = vpop.permute.xlu1 %1173  ;;  %v1517_v63 = vadd.f32 %v1516_v35, %v1502_v21  ;;  %v2145_v21 = vld [vmem:[%s2402_s16 + $0x160] sm:$0xff] }
 0x2b4   : > { %v1244_v33 = vmul.f32 %v2129_v57, %v3001_v4  ;;  %v1245_v37 = vmul.f32 %v2130_v17, %v3001_v4  ;;  %v1246_v31 = vmul.f32 %v2131_v2, %v3001_v4  ;;  %v1247_v19 = vmul.f32 %v2132_v62, %v3001_v4  ;;  %v2133_v4 = vld [vmem:[%s2402_s16 + $0x100] sm:$0xff]  ;;  %v2142_v57 = vld [vmem:[%s2402_s16 + $0x148] sm:$0xff]  ;;  %v2143_v17 = vld [vmem:[%s2402_s16 + $0x150] sm:$0xff] }
 0x2b6   : > { %v1286_v61 = vadd.f32 %v1285_v5, %v1244_v33  ;;  %v1307_v36 = vadd.f32 %v1306_v46, %v1245_v37  ;;  %v1328_v58 = vadd.f32 %v1327_v48, %v1246_v31  ;;  %v1349_v0 = vadd.f32 %v1348_v49, %v1247_v19  ;;  %v2146_v46 = vld [vmem:[%s2402_s16 + $0x168] sm:$0xff]  ;;  %v2147_v49 = vld [vmem:[%s2402_s16 + $0x170] sm:$0xff] }
 0x2b7   : > { %v1179_v39 = vpop.permute.xlu1 %1178 }
 0x2b8   : > { %v1248_v51 = vmul.f32 %v2133_v4, %v1179_v39  ;;  %v1249_v54 = vmul.f32 %v2134_v53, %v1179_v39  ;;  %v1250_v43 = vmul.f32 %v2135_v29, %v1179_v39  ;;  %v1251_v23 = vmul.f32 %v2136_v16, %v1179_v39 }
 0x2b9   : > { %v1503_v39 = vsel %vm1407_vm9, %v2983_v27, 0.0  ;;  %v2144_v27 = vld [vmem:[%s2402_s16 + $0x158] sm:$0xff] }
 0x2ba   : > { %v1287_v28 = vadd.f32 %v1286_v61, %v1248_v51  ;;  %v1308_v59 = vadd.f32 %v1307_v36, %v1249_v54  ;;  %v1329_v42 = vadd.f32 %v1328_v58, %v1250_v43  ;;  %v1350_v30 = vadd.f32 %v1349_v0, %v1251_v23  ;;  %v2148_v51 = vld [vmem:[%s2402_s16 + $0x178] sm:$0xff]  ;;  %v2149_v61 = vld [vmem:[%s2402_s16 + $0x180] sm:$0xff]  ;;  %v2150_v58 = vld [vmem:[%s2402_s16 + $0x188] sm:$0xff] }
 0x2bb   : > { %v1184_v22 = vpop.permute.xlu1 %1183  ;;  %v1518_v54 = vadd.f32 %v1517_v63, %v1503_v39  ;;  %v2154_v39 = vld [vmem:[%s2402_s16 + $0x1a8] sm:$0xff] }
 0x2bc   : > { %v1252_v14 = vmul.f32 %v2137_v3, %v1184_v22  ;;  %v1253_v20 = vmul.f32 %v2138_v18, %v1184_v22  ;;  %v1254_v47 = vmul.f32 %v2139_v32, %v1184_v22  ;;  %v1255_v24 = vmul.f32 %v2140_v25, %v1184_v22  ;;  %v2141_v22 = vld [vmem:[%s2402_s16 + $0x140] sm:$0xff]  ;;  %v2151_v3 = vld [vmem:[%s2402_s16 + $0x190] sm:$0xff]  ;;  %v2152_v18 = vld [vmem:[%s2402_s16 + $0x198] sm:$0xff] }
 0x2be   : > { %v1288_v2 = vadd.f32 %v1287_v28, %v1252_v14  ;;  %v1309_v31 = vadd.f32 %v1308_v59, %v1253_v20  ;;  %v1330_v62 = vadd.f32 %v1329_v42, %v1254_v47  ;;  %v1351_v19 = vadd.f32 %v1350_v30, %v1255_v24  ;;  %v1471_v20 = vpop.permute.xlu0 %1470  ;;  %v2155_v59 = vld [vmem:[%s2402_s16 + $0x1b0] sm:$0xff]  ;;  %v2156_v30 = vld [vmem:[%s2402_s16 + $0x1b8] sm:$0xff] }
 0x2bf   : > { %v1189_v15 = vpop.permute.xlu1 %1188 }
 0x2c0   : > { %v1256_v13 = vmul.f32 %v2141_v22, %v1189_v15  ;;  %v1257_v33 = vmul.f32 %v2142_v57, %v1189_v15  ;;  %v1258_v34 = vmul.f32 %v2143_v17, %v1189_v15  ;;  %v1259_v37 = vmul.f32 %v2144_v27, %v1189_v15 }
 0x2c1   : > { %v1504_v15 = vsel %vm1408_vm10, %v3003_v6, 0.0  ;;  %v1505_v57 = vsel %vm1409_vm11, %v3036_v1, 0.0  ;;  %v2160_v1 = vld [vmem:[%s2402_s16 + $0x1d8] sm:$0xff] }
 0x2c2   : > { %v1289_v29 = vadd.f32 %v1288_v2, %v1256_v13  ;;  %v1310_v43 = vadd.f32 %v1309_v31, %v1257_v33  ;;  %v1331_v16 = vadd.f32 %v1330_v62, %v1258_v34  ;;  %v1352_v23 = vadd.f32 %v1351_v19, %v1259_v37  ;;  %v3108_v2 = vpop.permute.xlu0 %1128  ;;  %v2157_v31 = vld [vmem:[%s2402_s16 + $0x1c0] sm:$0xff]  ;;  %v2158_v19 = vld [vmem:[%s2402_s16 + $0x1c8] sm:$0xff] }
 0x2c3   : > { %v1194_v26 = vpop.permute.xlu1 %1193  ;;  %v1519_v13 = vadd.f32 %v1518_v54, %v1504_v15  ;;  %v1507_v54 = vsel %vm1411_vm13, %v3076_v52, 0.0  ;;  %v1134_v10 = vrot.slane %v3108_v2, %v2904_v56  ;;  %v1540_v2 = vld [vmem:[#allocation3] sm:$0x1] (!%p1753_p6) }
 0x2c4   : > { %v1260_v5 = vmul.f32 %v2145_v21, %v1194_v26  ;;  %v1261_v48 = vmul.f32 %v2146_v46, %v1194_v26  ;;  %v1262_v4 = vmul.f32 %v2147_v49, %v1194_v26  ;;  %v1263_v53 = vmul.f32 %v2148_v51, %v1194_v26  ;;  %v2153_v26 = vld [vmem:[%s2402_s16 + $0x1a0] sm:$0xff] }
 0x2c5   : > { %v1520_v51 = vadd.f32 %v1519_v13, %v1505_v57  ;;  %2166 = vrcp.f32 (!%p1753_p6), %v1540_v2 }
 0x2c6   : > { %v1290_v32 = vadd.f32 %v1289_v29, %v1260_v5  ;;  %v1311_v47 = vadd.f32 %v1310_v43, %v1261_v48  ;;  %v1332_v25 = vadd.f32 %v1331_v16, %v1262_v4  ;;  %v1353_v24 = vadd.f32 %v1352_v23, %v1263_v53  ;;  %v1481_v55 = vpop.permute.xlu0 %1480 }
 0x2c7   : > { %v1199_v35 = vpop.permute.xlu1 %1198  ;;  %v1506_v53 = vsel %vm1410_vm12, %v3060_v41, 0.0  ;;  %v2164_v41 = vld [vmem:[%s2402_s16 + $0x1f8] sm:$0xff]  ;;  %v1510_v9 = vsel %vm1414_vm0, %v1481_v55, 0.0 }
 0x2c8   : > { %v1264_v36 = vmul.f32 %v2149_v61, %v1199_v35  ;;  %v1265_v0 = vmul.f32 %v2150_v58, %v1199_v35  ;;  %v1266_v14 = vmul.f32 %v2151_v3, %v1199_v35  ;;  %v1267_v40 = vmul.f32 %v2152_v18, %v1199_v35  ;;  %v2161_v61 = vld [vmem:[%s2402_s16 + $0x1e0] sm:$0xff]  ;;  %v2162_v58 = vld [vmem:[%s2402_s16 + $0x1e8] sm:$0xff]  ;;  %v2163_v3 = vld [vmem:[%s2402_s16 + $0x1f0] sm:$0xff] }
 0x2c9   : > { %v1521_v18 = vadd.f32 %v1520_v51, %v1506_v53 }
 0x2ca   : > { %v1291_v33 = vadd.f32 %v1290_v32, %v1264_v36  ;;  %v1312_v17 = vadd.f32 %v1311_v47, %v1265_v0  ;;  %v1333_v34 = vadd.f32 %v1332_v25, %v1266_v14  ;;  %v1354_v27 = vadd.f32 %v1353_v24, %v1267_v40 }
 0x2cb   : > { %v1204_v6 = vpop.permute.xlu1 %1203  ;;  %v1508_v40 = vsel %vm1412_vm14, %v1471_v20, 0.0  ;;  %v1522_v47 = vadd.f32 %v1521_v18, %v1507_v54 }
 0x2cc   : > { %v1268_v63 = vmul.f32 %v2153_v26, %v1204_v6  ;;  %v1269_v28 = vmul.f32 %v2154_v39, %v1204_v6  ;;  %v1270_v42 = vmul.f32 %v2155_v59, %v1204_v6  ;;  %v1271_v22 = vmul.f32 %v2156_v30, %v1204_v6 }
 0x2cd   : > { %v2299_v59 = vmov 1966171168  }
 0x2ce   : > { %v1292_v46 = vadd.f32 %v1291_v33, %v1268_v63  ;;  %v1313_v48 = vadd.f32 %v1312_v17, %v1269_v28  ;;  %v1334_v49 = vadd.f32 %v1333_v34, %v1270_v42  ;;  %v1355_v4 = vadd.f32 %v1354_v27, %v1271_v22  ;;  %v1491_v34 = vpop.permute.xlu0 %1490 }
 0x2cf   : > { %v1209_v37 = vpop.permute.xlu1 %1208  ;;  %v1523_v28 = vadd.f32 %v1522_v47, %v1508_v40  ;;  %v1371_v20 = vunpack.c.l.s4 %v2299_v59  ;;  %v2300_v47 = vmov (!%p1753_p6), 0   ;;  %v1567_v59 = vsub.s32 (!%p1753_p6), 2, %v2705_v12 }
 0x2d0   : > { %v1272_v62 = vmul.f32 %v2157_v31, %v1209_v37  ;;  %v1273_v35 = vmul.f32 %v2158_v19, %v1209_v37  ;;  %v1274_v21 = vmul.f32 %v2159_v45, %v1209_v37  ;;  %v1275_v5 = vmul.f32 %v2160_v1, %v1209_v37  ;;  %2165 = vset.pattern.permute.xlu0 (!%p1753_p6), %v2300_v47 }
 0x2d1   : > { %v1372_v7 = vunpack.c.0.s8 %v1371_v20 }
 0x2d2   : > { %v1293_v15 = vadd.f32 %v1292_v46, %v1272_v62  ;;  %v1314_v29 = vadd.f32 %v1313_v48, %v1273_v35  ;;  %v1335_v43 = vadd.f32 %v1334_v49, %v1274_v21  ;;  %v1356_v16 = vadd.f32 %v1355_v4, %v1275_v5 }
 0x2d3   : > { %v1214_v23 = vpop.permute.xlu1 %1213  ;;  %v1512_v5 = vsel %vm1416_vm2, %v1491_v34, 0.0  ;;  %v1375_v54 = vsub.s32 %v1372_v7, %v2705_v12  ;;  %v1602_v7 = vld [vmem:[#allocation3] sm:$0x1] (!%p1753_p6) }
 0x2d4   : > { %v1276_v36 = vmul.f32 %v2161_v61, %v1214_v23  ;;  %v1277_v0 = vmul.f32 %v2162_v58, %v1214_v23  ;;  %v1278_v50 = vmul.f32 %v2163_v3, %v1214_v23  ;;  %v1279_v14 = vmul.f32 %v2164_v41, %v1214_v23  ;;  %1603 = vst.msk [vmem:[#allocation14] sm:$0x1] (!%p1753_p6), %vm1123_vm3, %v1602_v7 }
 0x2d6   : > { %v1294_v60 = vadd.f32 %v1293_v15, %v1276_v36  ;;  %v1315_v52 = vadd.f32 %v1314_v29, %v1277_v0  ;;  %v1336_v6 = vadd.f32 %v1335_v43, %v1278_v50  ;;  %v1357_v32 = vadd.f32 %v1356_v16, %v1279_v14  ;;  %v1125_v50 = vld [vmem:[#allocation4] sm:$0xf] }
 0x2d7   : > { %v1476_v25 = vpop.permute.xlu1 %1475  ;;  %v1135_v40 = vmul.f32 %v1134_v10, %v1125_v50 }
 0x2d8   : > { %v1295_v24 = vrot.slane %v1294_v60, 4  ;;  %v1316_v26 = vrot.slane %v1315_v52, 4  ;;  %v1337_v63 = vrot.slane %v1336_v6, 4  ;;  %v1358_v39 = vrot.slane %v1357_v32, 4 }
 0x2d9   : > { %v1509_v42 = vsel %vm1413_vm15, %v1476_v25, 0.0  ;;  %v2167_v25 = vpop.eup (!%p1753_p6), %2166 }
 0x2da   : > { %v1296_v30 = vadd.f32 %v1295_v24, %v1294_v60  ;;  %v1317_v22 = vadd.f32 %v1316_v26, %v1315_v52  ;;  %v1338_v13 = vadd.f32 %v1337_v63, %v1336_v6  ;;  %v1359_v57 = vadd.f32 %v1358_v39, %v1357_v32  ;;  %1546 = vperm.xlu0 (!%p1753_p6), %2165, %v2167_v25   ;;  %v1554_v63 = vld [vmem:[%s3260_s6] sm:$0xf] (!%p1753_p6) }
 0x2db   : > { %v1524_v33 = vadd.f32 %v1523_v28, %v1509_v42  ;;  %v1486_v17 = vpop.permute.xlu1 %1485  ;;  %v1563_v28 = vsub.s32 (!%p1753_p6), 1, %v2705_v12  ;;  %v1571_v42 = vsub.s32 (!%p1753_p6), 3, %v2705_v12  ;;  %v1587_v12 = vld [vmem:[#allocation8] sm:$0x1] (!%p1753_p6) }
 0x2dc   : > { %v1297_v27 = vrot.slane %v1296_v30, 2  ;;  %v1318_v37 = vrot.slane %v1317_v22, 2  ;;  %v1339_v31 = vrot.slane %v1338_v13, 2  ;;  %v1360_v62 = vrot.slane %v1359_v57, 2 }
 0x2dd   : > { %v1511_v19 = vsel %vm1415_vm1, %v1486_v17, 0.0  ;;  %v1525_v35 = vadd.f32 %v1524_v33, %v1510_v9 }
 0x2de   : > { %v1298_v8 = vadd.f32 %v1297_v27, %v1296_v30  ;;  %v1319_v45 = vadd.f32 %v1318_v37, %v1317_v22  ;;  %v1340_v21 = vadd.f32 %v1339_v31, %v1338_v13  ;;  %v1361_v1 = vadd.f32 %v1360_v62, %v1359_v57  ;;  %v1600_v62 = vld [vmem:[#allocation2] sm:$0x1] (!%p1753_p6) }
 0x2df   : > { %v1526_v46 = vadd.f32 %v1525_v35, %v1511_v19  ;;  %v1496_v48 = vpop.permute.xlu1 %1495  ;;  %1601 = vst.msk [vmem:[#allocation13] sm:$0x1] (!%p1753_p6), %vm1123_vm3, %v1600_v62 }
 0x2e0   : > { %v1299_v49 = vrot.slane %v1298_v8, 1  ;;  %v1320_v4 = vrot.slane %v1319_v45, 1  ;;  %v1341_v51 = vrot.slane %v1340_v21, 1  ;;  %v1362_v53 = vrot.slane %v1361_v1, 1 }
 0x2e1   : > { %v1513_v15 = vsel %vm1417_vm4, %v1496_v48, 0.0  ;;  %v1527_v29 = vadd.f32 %v1526_v46, %v1512_v5 }
 0x2e2   : > { %v1300_v43 = vadd.f32 %v1299_v49, %v1298_v8  ;;  %v1321_v11 = vadd.f32 %v1320_v4, %v1319_v45  ;;  %v1342_v16 = vadd.f32 %v1341_v51, %v1340_v21  ;;  %v1363_v23 = vadd.f32 %v1362_v53, %v1361_v1 }
 0x2e3   : > { %v1528_v61 = vadd.f32 %v1527_v29, %v1513_v15  ;;  %v2301_v1 = vmov (!%p1753_p6), 0.0  }
 0x2e4   : > { %v1368_v36 = vcombine.low %v1300_v43, %v1321_v11  ;;  %v1369_v58 = vcombine.low %v1342_v16, %v1363_v23 }
 0x2e5   : > { %v1529_v0 = vrot.slane %v1528_v61, 4 }
 0x2e6   : > { %v1376_v44 = vrot.slane %v1368_v36, %v1375_v54  ;;  %v1383_v3 = vrot.slane %v1369_v58, %v1375_v54 }
 0x2e7   : > { %v1530_v41 = vadd.f32 %v1529_v0, %v1528_v61 }
 0x2e8   : > { %v1384_v14 = vcombine.low %v1376_v44, %v1383_v3 }
 0x2e9   : > { %v1531_v18 = vrot.slane %v1530_v41, 2 }
 0x2ea   : > { %v1391_v55 = vrot.slane %v1384_v14, %v1375_v54 }
 0x2eb   : > { %v1532_v60 = vadd.f32 %v1531_v18, %v1530_v41  ;;  %1539 = sbr.rel (%p1753_p6) target bundleno = 1046 (0x416), region = 56 }
 0x2ec   : > { %v1393_v52 = vadd.f32 %v1391_v55, %v1135_v40 }
 0x2ed   : > { %v1533_v6 = vrot.slane %v1532_v60, 1 }
 0x2ee   : > { %1398 = vst.msk [vmem:[#allocation4] sm:$0xf] %vm1396_vm5, %v1393_v52 }
 0x2ef   : > { %v1534_v32 = vadd.f32 %v1533_v6, %v1532_v60 }
 0x2f1   : > { %1535 = vst [vmem:[%s385_s30] sm:$0x1] %v1534_v32 }
 0x2f5   : > { %v1543_v38 = vld [vmem:[#allocation4] sm:$0xf] }
 0x359   : > { %v1547_v24 = vpop.permute.xlu0 %1546 }
 0x35a   : > { %v1552_v26 = vrot.slane %v1547_v24, %v2904_v56 }
 0x35c   : > { %v1553_v39 = vmul.f32 %v1552_v26, %v1543_v38 }
 0x35e   : > { %v1555_v20 = vmul.f32 %v1554_v63, %v1553_v39 }
 0x360   : > { %v1560_v30 = vrot.slane %v1555_v20, %v2904_v56  ;;  %v1564_v22 = vrot.slane %v1555_v20, %v1563_v28  ;;  %v1568_v13 = vrot.slane %v1555_v20, %v1567_v59  ;;  %v1572_v57 = vrot.slane %v1555_v20, %v1571_v42 }
 0x362   : > { %v1578_v9 = vsel %vm1577_vm6, %v1560_v30, 0.0  ;;  %v1579_v33 = vsel %vm1577_vm6, %v1564_v22, 0.0  ;;  %v1581_v34 = vsel %vm1577_vm6, %v1568_v13, 0.0  ;;  %v1583_v37 = vsel %vm1577_vm6, %v1572_v57, 0.0 }
 0x363   : > { %v1580_v17 = vadd.f32 %v1579_v33, %v1578_v9 }
 0x365   : > { %v1582_v27 = vadd.f32 %v1581_v34, %v1580_v17 }
 0x367   : > { %v1584_v31 = vadd.f32 %v1583_v37, %v1582_v27 }
 0x369   : > { %1585 = vadd.xlane.f32.xlu0 %v1584_v31 }
 0x3f6   : > { %v1586_v19 = vpop.xlane.xlu0 %1585 }
 0x3f7   : > { %v1588_v56 = vadd.f32 %v1587_v12, %v1586_v19 }
 0x3f9   : > { %v1754_v35 = vmul.f32 -1.442695, %v1588_v56 }
 0x3fb   : > { %2168 = vpow2.f32 %v1754_v35 }
 0x405   : > { %v2169_v8 = vpop.eup %2168 }
 0x406   : > { %v1592_v45 = vadd.f32 1.0, %v2169_v8 }
 0x408   : > { %2170 = vrcp.f32 %v1592_v45 }
 0x412   : > { %v2171_v21 = vpop.eup %2170 }
 0x413   : > { %1595 = vst.msk [vmem:[#allocation9] sm:$0x1] %vm1123_vm3, %v2171_v21  ;;  %vm1596_vm7 = vcmp.ge.f32.partialorder %v2171_v21, 0.5 }
 0x414   : > { %v1755_v5 = vsel %vm1596_vm7, 1.0, %v2301_v1 }
 0x415   : > { %1599 = vst.msk [vmem:[#allocation11] sm:$0x1] %vm1123_vm3, %v1755_v5 }
 0x416 PF: > { %p2007_p7 = scmp.eq.s32.totalorder %s2386_s0, 2  ;;  %s2302_s7 = smov [#allocation11]  }
 0x417   : > { %s1625_s30 = sshll.u32 %s2302_s7, 4  ;;  %s2303_s26 = smov [#allocation9]   ;;  %s1626_s30 = int_to_ptr.vmem [resolvable:$true] %s1625_s30 }
 0x418   : > { %s1614_s5 = sshll.u32 %s2303_s26, 4  ;;  %s2172_s28 = scalar_lea.vmem %s1626_s30, 16  ;;  %s1615_s5 = int_to_ptr.vmem [resolvable:$true] %s1614_s5 }
 0x419   : > { %p2173_p8 = scmp.ne.s32.totalorder %s1626_s30, %s2172_s28  ;;  %s2178_s29 = scalar_lea.vmem %s1626_s30, 32 }
 0x41a   : > { %p2179_p11 = scmp.lt.s32.totalorder %s1626_s30, %s1626_s30  ;;  %p2180_p12 = scmp.lt.s32.totalorder %s2178_s29, %s2172_s28 }
 0x41b   : > { %p2174_p9 = pnand %p2173_p8, %p2007_p7 }
 0x41c   : > { %p2181_p13 = por %p2180_p12, %p2179_p11 }
 0x41d   : > { %p2175_p10 = pneg %p2174_p9 }
 0x41f   : > { %p2182_p0 = pnand %p2181_p13, %p2175_p10 }
 0x421   : > { %2185 = shalt.err (!%p2182_p0)
}
 0x422   : > { %s2186_s15 = scalar_lea.hbm %s3262_s9, 16 }
 0x423   : > { %p2187_p1 = scmp.ne.s32.totalorder %s3262_s9, %s2186_s15  ;;  %p2192_p4 = scmp.lt.u32.totalorder %s2186_s15, %s3262_s9 }
 0x425   : > { %p2188_p2 = pnand %p2187_p1, %p2007_p7 }
 0x427   : > { %p2189_p3 = pneg %p2188_p2 }
 0x429   : > { %p2194_p5 = pnand %p2192_p4, %p2189_p3 }
 0x42b   : > { %2197 = shalt.err (!%p2194_p5)
}
 0x42c   : > { %1994 = dma.vmem_to_hbm [thread:$0]  (%p2007_p7), %s1626_s30, 16, %s3262_s9, [#allocation12]  }
 0x42d   : > { %s2198_s16 = scalar_lea.vmem %s1615_s5, 16  ;;  %s2204_s23 = scalar_lea.vmem %s1615_s5, 32 }
 0x42e   : > { %p2199_p6 = scmp.ne.s32.totalorder %s1615_s5, %s2198_s16  ;;  %p2205_p10 = scmp.lt.s32.totalorder %s1615_s5, %s1615_s5 }
 0x42f   : > { %p2206_p11 = scmp.lt.s32.totalorder %s2204_s23, %s2198_s16 }
 0x430   : > { %p2200_p8 = pnand %p2199_p6, %p2007_p7 }
 0x431   : > { %p2207_p12 = por %p2206_p11, %p2205_p10 }
 0x432   : > { %p2201_p9 = pneg %p2200_p8 }
 0x434   : > { %p2208_p13 = pnand %p2207_p12, %p2201_p9 }
 0x436   : > { %2211 = shalt.err (!%p2208_p13)
}
 0x437   : > { %s2212_s7 = scalar_lea.hbm %s3261_s8, 16 }
 0x438   : > { %p2213_p0 = scmp.ne.s32.totalorder %s3261_s8, %s2212_s7  ;;  %p2218_p3 = scmp.lt.u32.totalorder %s2212_s7, %s3261_s8 }
 0x43a   : > { %p2214_p1 = pnand %p2213_p0, %p2007_p7 }
 0x43c   : > { %p2215_p2 = pneg %p2214_p1 }
 0x43e   : > { %p2220_p4 = pnand %p2218_p3, %p2215_p2 }
 0x440   : > { %2223 = shalt.err (!%p2220_p4)
}
 0x441   : > { %1992 = dma.vmem_to_hbm [thread:$0]  (%p2007_p7), %s1615_s5, 16, %s3261_s8, [#allocation10]  }
 0x442   : > { %s2304_s15 = smov [#allocation13]   ;;  %s2305_s18 = smov [#allocation14]  }
 0x443   : > { %s1639_s17 = sshll.u32 %s2304_s15, 4  ;;  %s1650_s19 = sshll.u32 %s2305_s18, 4  ;;  %s1640_s17 = int_to_ptr.vmem [resolvable:$true] %s1639_s17  ;;  %s1651_s19 = int_to_ptr.vmem [resolvable:$true] %s1650_s19 }
 0x444   : > { %s2224_s20 = scalar_lea.vmem %s1640_s17, 16  ;;  %s2230_s21 = scalar_lea.vmem %s1640_s17, 32 }
 0x445   : > { %p2225_p5 = scmp.ne.s32.totalorder %s1640_s17, %s2224_s20  ;;  %p2231_p9 = scmp.lt.s32.totalorder %s1640_s17, %s1640_s17 }
 0x446   : > { %p2232_p10 = scmp.lt.s32.totalorder %s2230_s21, %s2224_s20 }
 0x447   : > { %p2226_p6 = pnand %p2225_p5, %p2007_p7 }
 0x448   : > { %p2233_p11 = por %p2232_p10, %p2231_p9 }
 0x449   : > { %p2227_p8 = pneg %p2226_p6 }
 0x44b   : > { %p2234_p12 = pnand %p2233_p11, %p2227_p8 }
 0x44d   : > { %2237 = shalt.err (!%p2234_p12)
}
 0x44e   : > { %s2238_s5 = scalar_lea.hbm %s3264_s11, 16 }
 0x44f   : > { %p2239_p13 = scmp.ne.s32.totalorder %s3264_s11, %s2238_s5  ;;  %p2244_p2 = scmp.lt.u32.totalorder %s2238_s5, %s3264_s11 }
 0x451   : > { %p2240_p0 = pnand %p2239_p13, %p2007_p7 }
 0x453   : > { %p2241_p1 = pneg %p2240_p0 }
 0x455   : > { %p2246_p3 = pnand %p2244_p2, %p2241_p1 }
 0x457   : > { %2249 = shalt.err (!%p2246_p3)
}
 0x458   : > { %1996 = dma.vmem_to_hbm [thread:$0]  (%p2007_p7), %s1640_s17, 16, %s3264_s11, [#allocation12]  }
 0x459   : > { %s2250_s30 = scalar_lea.vmem %s1651_s19, 16  ;;  %s2256_s29 = scalar_lea.vmem %s1651_s19, 32 }
 0x45a   : > { %p2251_p4 = scmp.ne.s32.totalorder %s1651_s19, %s2250_s30  ;;  %p2257_p8 = scmp.lt.s32.totalorder %s1651_s19, %s1651_s19 }
 0x45b   : > { %p2258_p9 = scmp.lt.s32.totalorder %s2256_s29, %s2250_s30 }
 0x45c   : > { %p2252_p5 = pnand %p2251_p4, %p2007_p7 }
 0x45d   : > { %p2259_p10 = por %p2258_p9, %p2257_p8 }
 0x45e   : > { %p2253_p6 = pneg %p2252_p5 }
 0x460   : > { %p2260_p11 = pnand %p2259_p10, %p2253_p6 }
 0x462   : > { %2263 = shalt.err (!%p2260_p11)
}
 0x463   : > { %s2264_s15 = scalar_lea.hbm %s3265_s12, 16 }
 0x464   : > { %p2265_p12 = scmp.ne.s32.totalorder %s3265_s12, %s2264_s15  ;;  %p2270_p1 = scmp.lt.u32.totalorder %s2264_s15, %s3265_s12 }
 0x466   : > { %p2266_p13 = pnand %p2265_p12, %p2007_p7 }
 0x468   : > { %p2267_p0 = pneg %p2266_p13 }
 0x46a   : > { %p2272_p2 = pnand %p2270_p1, %p2267_p0 }
 0x46c   : > { %2275 = shalt.err (!%p2272_p2)
}
 0x46d   : > { %1998 = dma.vmem_to_hbm [thread:$0]  (%p2007_p7), %s1651_s19, 16, %s3265_s12, [#allocation15]  }
 0x46e   : > { %2281 = dma.done.wait (%p2007_p7), [#allocation10], 16  }
 0x46f   : > { %2283 = vsyncadd (%p2007_p7), [#allocation10], 4294967280 }
 0x470   : > { %2285 = dma.done.wait (%p2007_p7), [#allocation12], 32  }
 0x471   : > { %2287 = vsyncadd (%p2007_p7), [#allocation12], 4294967264 }
 0x472   : > { %2289 = dma.done.wait (%p2007_p7), [#allocation15], 16  }
 0x473   : > { %2291 = vsyncadd (%p2007_p7), [#allocation15], 4294967280 }
 0x474 PF: > { %s31_s27 = sadd.s32 1, %s2294_s27  }
 0x475   : > { %p28_p3 = scmp.ge.s32.totalorder %s31_s27, 5  }
 0x477   :  { %30 = sbr.rel (!%p28_p3) target bundleno = 6 (0x6), region = 119 }
 0x47e   :  { %1681 = vsyncpa [#allocation10], 1 }
 0x47f   :  { %1683 = vsyncpa [#allocation10 + $0x1], 1 }
 0x480   :  { %1684 = vsyncpa [#allocation12], 1 }
 0x481   :  { %1685 = vsyncpa [#allocation15], 1 }

</bundles_post_ra>
